<compile_context>
chip_gen: v6e
topology: v6e:2x2x1
jax: 0.10.0
libtpu: 0.0.40
codegen_flags: <defaults>
</compile_context>

<pallas_src>
import jax
import jax.numpy as jnp
from jax import lax
from jax.experimental import pallas as pl
from jax.experimental.pallas import tpu as pltpu

INPUT_SIZE = 1
HIDDEN = 100           # logical hidden size (matches the PyTorch module)
OUTPUT_SIZE = 1
HP = 128               # lane-padded hidden size
GP = 4 * HP            # padded gate width (512)


def _sigmoid(z):
    # Mathematically identical to 1/(1+exp(-z)); lowers to a single EUP tanh
    # plus cheap VPU mul/add instead of exp + full-precision divide.
    return 0.5 * (jnp.tanh(0.5 * z) + 1.0)


def lstm_kernel(x_ref, wih_ref, whh_ref, b_ref, wlin_ref, blin_ref,
                out_ref, pre_scr):
    """Whole sequence resident in VMEM; recurrence is an unrolled in-kernel loop.

    x_ref    : (seq_len, INPUT_SIZE)  f32
    wih_ref  : (INPUT_SIZE, GP)       f32   (W_ih^T, gate-wise lane-padded)
    whh_ref  : (HP, GP)               f32   (W_hh^T, padded rows/cols are zero)
    b_ref    : (1, GP)                f32   (b_ih + b_hh, padded lanes zero)
    wlin_ref : (OUTPUT_SIZE, HP)      f32   (linear weight, padded lanes zero)
    blin_ref : (1, OUTPUT_SIZE)       f32
    out_ref  : (1, OUTPUT_SIZE)       f32   == predictions[-1]
    pre_scr  : (seq_len, GP)          VMEM scratch for the hoisted input proj
    """
    seq_len = x_ref.shape[0]

    # Hoisted input projection + bias for ALL timesteps (INPUT_SIZE == 1, so this
    # is a single broadcast multiply-add, done once outside the serial loop).
    pre_scr[...] = x_ref[...] * wih_ref[...] + b_ref[...]          # (seq_len, GP)

    def step(t, carry):
        h, c = carry                                               # (1, HP) each, vregs
        gates = pre_scr[pl.ds(t, 1), :] + jnp.dot(
            h, whh_ref[...], preferred_element_type=jnp.float32)   # (1, GP)
        # Gate order matches PyTorch nn.LSTM: [i, f, g, o]; 128-aligned slices.
        i_g = _sigmoid(gates[:, 0 * HP:1 * HP])
        f_g = _sigmoid(gates[:, 1 * HP:2 * HP])
        g_g = jnp.tanh(gates[:, 2 * HP:3 * HP])
        o_g = _sigmoid(gates[:, 3 * HP:4 * HP])
        c = f_g * c + i_g * g_g
        h = o_g * jnp.tanh(c)
        return (h, c)

    h0 = jnp.zeros((1, HP), jnp.float32)
    c0 = jnp.zeros((1, HP), jnp.float32)
    h_T, _ = lax.fori_loop(0, seq_len, step, (h0, c0), unroll=True)

    # predictions[-1] == linear(h_T): lane reduction (padded lanes are zero).
    out_ref[...] = (jnp.sum(h_T * wlin_ref[...], axis=-1, keepdims=True)
                    + blin_ref[...])


def _pad_params(params):
    """Pack PyTorch-shaped params into the padded, pre-transposed kernel layout."""
    w_ih, w_hh, b_ih, b_hh, w_lin, b_lin = params
    pad_l = HP - HIDDEN

    def pad_gate_cols(m):
        # m: (in, 4*HIDDEN) -> (in, GP), padding each gate block to HP lanes.
        parts = jnp.split(m, 4, axis=1)
        parts = [jnp.pad(p, ((0, 0), (0, pad_l))) for p in parts]
        return jnp.concatenate(parts, axis=1)

    wih_t = pad_gate_cols(w_ih.T)                                   # (1, GP)
    whh_t = jnp.pad(pad_gate_cols(w_hh.T), ((0, pad_l), (0, 0)))    # (HP, GP)
    b = pad_gate_cols((b_ih + b_hh).reshape(1, -1))                 # (1, GP)
    wlin = jnp.pad(w_lin, ((0, 0), (0, pad_l)))                     # (OUTPUT_SIZE, HP)
    blin = b_lin.reshape(1, -1)                                     # (1, OUTPUT_SIZE)
    return wih_t, whh_t, b, wlin, blin


def lstm_forward(input_seq, params):
    """Mirrors LSTM.forward (from zero initial state): returns predictions[-1]."""
    wih_t, whh_t, b, wlin, blin = _pad_params(params)
    x = input_seq.reshape(-1, INPUT_SIZE).astype(jnp.float32)
    seq_len = x.shape[0]

    vmem_spec = pl.BlockSpec(memory_space=pltpu.MemorySpace.VMEM)
    out = pl.pallas_call(
        lstm_kernel,
        out_shape=jax.ShapeDtypeStruct((1, OUTPUT_SIZE), jnp.float32),
        in_specs=[vmem_spec] * 6,          # x, wih, whh, b, wlin, blin
        out_specs=vmem_spec,
        scratch_shapes=[pltpu.VMEM((seq_len, GP), jnp.float32)],   # hoisted input proj
        cost_estimate=pl.CostEstimate(
            flops=2 * seq_len * HP * GP,                 # recurrent matmuls
            transcendentals=5 * seq_len * HP,            # 5 tanh-width-HP per step
            bytes_accessed=4 * (HP * GP + GP + seq_len * (INPUT_SIZE + GP)
                                + 2 * HP + 2),
        ),
    )(x, wih_t, whh_t, b, wlin, blin)
    return out.reshape(OUTPUT_SIZE)


def init_params(key):
    """Deterministic init, same shapes / uniform(+-1/sqrt(H)) scheme as PyTorch."""
    k = 1.0 / jnp.sqrt(jnp.float32(HIDDEN))
    keys = jax.random.split(key, 6)
    w_ih = jax.random.uniform(keys[0], (4 * HIDDEN, INPUT_SIZE), jnp.float32, -k, k)
    w_hh = jax.random.uniform(keys[1], (4 * HIDDEN, HIDDEN), jnp.float32, -k, k)
    b_ih = jax.random.uniform(keys[2], (4 * HIDDEN,), jnp.float32, -k, k)
    b_hh = jax.random.uniform(keys[3], (4 * HIDDEN,), jnp.float32, -k, k)
    w_lin = jax.random.uniform(keys[4], (OUTPUT_SIZE, HIDDEN), jnp.float32, -k, k)
    b_lin = jax.random.uniform(keys[5], (OUTPUT_SIZE,), jnp.float32, -k, k)
    return (w_ih, w_hh, b_ih, b_hh, w_lin, b_lin)


def lstm_forward_ref(input_seq, params):
    """Pure-JAX reference of the PyTorch forward (gate order i,f,g,o), unpadded."""
    w_ih, w_hh, b_ih, b_hh, w_lin, b_lin = params
    x = input_seq.reshape(-1, INPUT_SIZE).astype(jnp.float32)
    H = HIDDEN
    wih_t, whh_t = w_ih.T, w_hh.T
    b = (b_ih + b_hh).reshape(1, -1)

    def step(carry, x_t):
        h, c = carry
        gates = x_t[None, :] @ wih_t + h @ whh_t + b
        i = _sigmoid(gates[:, 0 * H:1 * H])
        f = _sigmoid(gates[:, 1 * H:2 * H])
        g = jnp.tanh(gates[:, 2 * H:3 * H])
        o = _sigmoid(gates[:, 3 * H:4 * H])
        c = f * c + i * g
        h = o * jnp.tanh(c)
        return (h, c), None

    h0 = jnp.zeros((1, H), jnp.float32)
    c0 = jnp.zeros((1, H), jnp.float32)
    (h_T, _), _ = lax.scan(step, (h0, c0), x)
    return (h_T @ w_lin.T + b_lin.reshape(1, -1)).reshape(OUTPUT_SIZE)


if __name__ == "__main__":
    key = jax.random.PRNGKey(0)
    k_param, k_data = jax.random.split(key)

    params = init_params(k_param)
    seq_len = 8
    input_seq = jax.random.normal(k_data, (seq_len,), jnp.float32)  # 1-D sequence

    out = lstm_forward(input_seq, params)
    out = jax.block_until_ready(out)

    ref = lstm_forward_ref(input_seq, params)
    assert out.shape == (OUTPUT_SIZE,)
    assert jnp.allclose(out, ref, rtol=1e-5, atol=1e-5), (out, ref)

    print("KERNEL_OK")
</pallas_src>

<mosaic_0001>
module attributes {stable_mosaic.version = 11 : i64} {
  func.func @lstm_kernel(%arg0: memref<8x1xf32, #tpu.memory_space<vmem>>, %arg1: memref<1x512xf32, #tpu.memory_space<vmem>>, %arg2: memref<128x512xf32, #tpu.memory_space<vmem>>, %arg3: memref<1x512xf32, #tpu.memory_space<vmem>>, %arg4: memref<1x128xf32, #tpu.memory_space<vmem>>, %arg5: memref<1x1xf32, #tpu.memory_space<vmem>>, %arg6: memref<1x1xf32, #tpu.memory_space<vmem>>, %arg7: memref<8x512xf32, #tpu.memory_space<vmem>>) attributes {dimension_semantics = [], scalar_prefetch = 0 : i64, scratch_operands = 1 : i64, tpu.core_type = #tpu.core_type<tc>} {
    %c0 = arith.constant 0 : index
    %c0_0 = arith.constant 0 : index
    %0 = vector.load %arg0[%c0, %c0_0] : memref<8x1xf32, #tpu.memory_space<vmem>>, vector<8x1xf32>
    %c0_1 = arith.constant 0 : index
    %c0_2 = arith.constant 0 : index
    %1 = vector.load %arg1[%c0_1, %c0_2] : memref<1x512xf32, #tpu.memory_space<vmem>>, vector<1x512xf32>
    %2 = vector.broadcast %0 : vector<8x1xf32> to vector<8x512xf32>
    %3 = vector.broadcast %1 : vector<1x512xf32> to vector<8x512xf32>
    %4 = arith.mulf %2, %3 : vector<8x512xf32>
    %c0_3 = arith.constant 0 : index
    %c0_4 = arith.constant 0 : index
    %5 = vector.load %arg3[%c0_3, %c0_4] : memref<1x512xf32, #tpu.memory_space<vmem>>, vector<1x512xf32>
    %6 = vector.broadcast %5 : vector<1x512xf32> to vector<8x512xf32>
    %7 = arith.addf %4, %6 : vector<8x512xf32>
    %c0_5 = arith.constant 0 : index
    %c0_6 = arith.constant 0 : index
    %8 = vector.load %arg7[%c0_5, %c0_6] : memref<8x512xf32, #tpu.memory_space<vmem>>, vector<8x512xf32>
    tpu.vector_store %arg7[%c0_5, %c0_6], %7 {strides = array<i32>} : memref<8x512xf32, #tpu.memory_space<vmem>>, vector<8x512xf32>,
    %cst = arith.constant 0.000000e+00 : f32
    %9 = vector.broadcast %cst : f32 to vector<1x128xf32>
    %cst_7 = arith.constant 0.000000e+00 : f32
    %10 = vector.broadcast %cst_7 : f32 to vector<1x128xf32>
    %c0_i32 = arith.constant 0 : i32
    %11 = arith.index_cast %c0_i32 : i32 to index
    %c0_8 = arith.constant 0 : index
    %12 = vector.load %arg7[%11, %c0_8] : memref<8x512xf32, #tpu.memory_space<vmem>>, vector<1x512xf32>
    %c0_9 = arith.constant 0 : index
    %c0_10 = arith.constant 0 : index
    %13 = vector.load %arg2[%c0_9, %c0_10] : memref<128x512xf32, #tpu.memory_space<vmem>>, vector<128x512xf32>
    %cst_11 = arith.constant dense<0.000000e+00> : vector<1x512xf32>
    %14 = tpu.matmul %9, %13, %cst_11 {dimension_numbers = #tpu.dot_dimension_numbers<[1], [0], [0], [1], [0, 0, 1, 1], [], []>} : vector<1x128xf32>, vector<128x512xf32>, vector<1x512xf32> -> vector<1x512xf32>
    %15 = arith.addf %12, %14 : vector<1x512xf32>
    %16 = vector.extract_strided_slice %15 {offsets = [0, 0], sizes = [1, 128], strides = [1, 1]} : vector<1x512xf32> to vector<1x128xf32>
    %cst_12 = arith.constant 5.000000e-01 : f32
    %17 = vector.broadcast %cst_12 : f32 to vector<1x128xf32>
    %18 = arith.mulf %17, %16 : vector<1x128xf32>
    %19 = math.tanh %18 : vector<1x128xf32>
    %cst_13 = arith.constant 1.000000e+00 : f32
    %20 = vector.broadcast %cst_13 : f32 to vector<1x128xf32>
    %21 = arith.addf %19, %20 : vector<1x128xf32>
    %cst_14 = arith.constant 5.000000e-01 : f32
    %22 = vector.broadcast %cst_14 : f32 to vector<1x128xf32>
    %23 = arith.mulf %22, %21 : vector<1x128xf32>
    %24 = vector.extract_strided_slice %15 {offsets = [0, 128], sizes = [1, 128], strides = [1, 1]} : vector<1x512xf32> to vector<1x128xf32>
    %cst_15 = arith.constant 5.000000e-01 : f32
    %25 = vector.broadcast %cst_15 : f32 to vector<1x128xf32>
    %26 = arith.mulf %25, %24 : vector<1x128xf32>
    %27 = math.tanh %26 : vector<1x128xf32>
    %cst_16 = arith.constant 1.000000e+00 : f32
    %28 = vector.broadcast %cst_16 : f32 to vector<1x128xf32>
    %29 = arith.addf %27, %28 : vector<1x128xf32>
    %cst_17 = arith.constant 5.000000e-01 : f32
    %30 = vector.broadcast %cst_17 : f32 to vector<1x128xf32>
    %31 = arith.mulf %30, %29 : vector<1x128xf32>
    %32 = vector.extract_strided_slice %15 {offsets = [0, 256], sizes = [1, 128], strides = [1, 1]} : vector<1x512xf32> to vector<1x128xf32>
    %33 = math.tanh %32 : vector<1x128xf32>
    %34 = vector.extract_strided_slice %15 {offsets = [0, 384], sizes = [1, 128], strides = [1, 1]} : vector<1x512xf32> to vector<1x128xf32>
    %cst_18 = arith.constant 5.000000e-01 : f32
    %35 = vector.broadcast %cst_18 : f32 to vector<1x128xf32>
    %36 = arith.mulf %35, %34 : vector<1x128xf32>
    %37 = math.tanh %36 : vector<1x128xf32>
    %cst_19 = arith.constant 1.000000e+00 : f32
    %38 = vector.broadcast %cst_19 : f32 to vector<1x128xf32>
    %39 = arith.addf %37, %38 : vector<1x128xf32>
    %cst_20 = arith.constant 5.000000e-01 : f32
    %40 = vector.broadcast %cst_20 : f32 to vector<1x128xf32>
    %41 = arith.mulf %40, %39 : vector<1x128xf32>
    %42 = arith.mulf %31, %10 : vector<1x128xf32>
    %43 = arith.mulf %23, %33 : vector<1x128xf32>
    %44 = arith.addf %42, %43 : vector<1x128xf32>
    %45 = math.tanh %44 : vector<1x128xf32>
    %46 = arith.mulf %41, %45 : vector<1x128xf32>
    %c1_i32 = arith.constant 1 : i32
    %47 = arith.index_cast %c1_i32 : i32 to index
    %c0_21 = arith.constant 0 : index
    %48 = vector.load %arg7[%47, %c0_21] : memref<8x512xf32, #tpu.memory_space<vmem>>, vector<1x512xf32>
    %c0_22 = arith.constant 0 : index
    %c0_23 = arith.constant 0 : index
    %49 = vector.load %arg2[%c0_22, %c0_23] : memref<128x512xf32, #tpu.memory_space<vmem>>, vector<128x512xf32>
    %cst_24 = arith.constant dense<0.000000e+00> : vector<1x512xf32>
    %50 = tpu.matmul %46, %49, %cst_24 {dimension_numbers = #tpu.dot_dimension_numbers<[1], [0], [0], [1], [0, 0, 1, 1], [], []>} : vector<1x128xf32>, vector<128x512xf32>, vector<1x512xf32> -> vector<1x512xf32>
    %51 = arith.addf %48, %50 : vector<1x512xf32>
    %52 = vector.extract_strided_slice %51 {offsets = [0, 0], sizes = [1, 128], strides = [1, 1]} : vector<1x512xf32> to vector<1x128xf32>
    %cst_25 = arith.constant 5.000000e-01 : f32
    %53 = vector.broadcast %cst_25 : f32 to vector<1x128xf32>
    %54 = arith.mulf %53, %52 : vector<1x128xf32>
    %55 = math.tanh %54 : vector<1x128xf32>
    %cst_26 = arith.constant 1.000000e+00 : f32
    %56 = vector.broadcast %cst_26 : f32 to vector<1x128xf32>
    %57 = arith.addf %55, %56 : vector<1x128xf32>
    %cst_27 = arith.constant 5.000000e-01 : f32
    %58 = vector.broadcast %cst_27 : f32 to vector<1x128xf32>
    %59 = arith.mulf %58, %57 : vector<1x128xf32>
    %60 = vector.extract_strided_slice %51 {offsets = [0, 128], sizes = [1, 128], strides = [1, 1]} : vector<1x512xf32> to vector<1x128xf32>
    %cst_28 = arith.constant 5.000000e-01 : f32
    %61 = vector.broadcast %cst_28 : f32 to vector<1x128xf32>
    %62 = arith.mulf %61, %60 : vector<1x128xf32>
    %63 = math.tanh %62 : vector<1x128xf32>
    %cst_29 = arith.constant 1.000000e+00 : f32
    %64 = vector.broadcast %cst_29 : f32 to vector<1x128xf32>
    %65 = arith.addf %63, %64 : vector<1x128xf32>
    %cst_30 = arith.constant 5.000000e-01 : f32
    %66 = vector.broadcast %cst_30 : f32 to vector<1x128xf32>
    %67 = arith.mulf %66, %65 : vector<1x128xf32>
    %68 = vector.extract_strided_slice %51 {offsets = [0, 256], sizes = [1, 128], strides = [1, 1]} : vector<1x512xf32> to vector<1x128xf32>
    %69 = math.tanh %68 : vector<1x128xf32>
    %70 = vector.extract_strided_slice %51 {offsets = [0, 384], sizes = [1, 128], strides = [1, 1]} : vector<1x512xf32> to vector<1x128xf32>
    %cst_31 = arith.constant 5.000000e-01 : f32
    %71 = vector.broadcast %cst_31 : f32 to vector<1x128xf32>
    %72 = arith.mulf %71, %70 : vector<1x128xf32>
    %73 = math.tanh %72 : vector<1x128xf32>
    %cst_32 = arith.constant 1.000000e+00 : f32
    %74 = vector.broadcast %cst_32 : f32 to vector<1x128xf32>
    %75 = arith.addf %73, %74 : vector<1x128xf32>
    %cst_33 = arith.constant 5.000000e-01 : f32
    %76 = vector.broadcast %cst_33 : f32 to vector<1x128xf32>
    %77 = arith.mulf %76, %75 : vector<1x128xf32>
    %78 = arith.mulf %67, %44 : vector<1x128xf32>
    %79 = arith.mulf %59, %69 : vector<1x128xf32>
    %80 = arith.addf %78, %79 : vector<1x128xf32>
    %81 = math.tanh %80 : vector<1x128xf32>
    %82 = arith.mulf %77, %81 : vector<1x128xf32>
    %c2_i32 = arith.constant 2 : i32
    %83 = arith.index_cast %c2_i32 : i32 to index
    %c0_34 = arith.constant 0 : index
    %84 = vector.load %arg7[%83, %c0_34] : memref<8x512xf32, #tpu.memory_space<vmem>>, vector<1x512xf32>
    %c0_35 = arith.constant 0 : index
    %c0_36 = arith.constant 0 : index
    %85 = vector.load %arg2[%c0_35, %c0_36] : memref<128x512xf32, #tpu.memory_space<vmem>>, vector<128x512xf32>
    %cst_37 = arith.constant dense<0.000000e+00> : vector<1x512xf32>
    %86 = tpu.matmul %82, %85, %cst_37 {dimension_numbers = #tpu.dot_dimension_numbers<[1], [0], [0], [1], [0, 0, 1, 1], [], []>} : vector<1x128xf32>, vector<128x512xf32>, vector<1x512xf32> -> vector<1x512xf32>
    %87 = arith.addf %84, %86 : vector<1x512xf32>
    %88 = vector.extract_strided_slice %87 {offsets = [0, 0], sizes = [1, 128], strides = [1, 1]} : vector<1x512xf32> to vector<1x128xf32>
    %cst_38 = arith.constant 5.000000e-01 : f32
    %89 = vector.broadcast %cst_38 : f32 to vector<1x128xf32>
    %90 = arith.mulf %89, %88 : vector<1x128xf32>
    %91 = math.tanh %90 : vector<1x128xf32>
    %cst_39 = arith.constant 1.000000e+00 : f32
    %92 = vector.broadcast %cst_39 : f32 to vector<1x128xf32>
    %93 = arith.addf %91, %92 : vector<1x128xf32>
    %cst_40 = arith.constant 5.000000e-01 : f32
    %94 = vector.broadcast %cst_40 : f32 to vector<1x128xf32>
    %95 = arith.mulf %94, %93 : vector<1x128xf32>
    %96 = vector.extract_strided_slice %87 {offsets = [0, 128], sizes = [1, 128], strides = [1, 1]} : vector<1x512xf32> to vector<1x128xf32>
    %cst_41 = arith.constant 5.000000e-01 : f32
    %97 = vector.broadcast %cst_41 : f32 to vector<1x128xf32>
    %98 = arith.mulf %97, %96 : vector<1x128xf32>
    %99 = math.tanh %98 : vector<1x128xf32>
    %cst_42 = arith.constant 1.000000e+00 : f32
    %100 = vector.broadcast %cst_42 : f32 to vector<1x128xf32>
    %101 = arith.addf %99, %100 : vector<1x128xf32>
    %cst_43 = arith.constant 5.000000e-01 : f32
    %102 = vector.broadcast %cst_43 : f32 to vector<1x128xf32>
    %103 = arith.mulf %102, %101 : vector<1x128xf32>
    %104 = vector.extract_strided_slice %87 {offsets = [0, 256], sizes = [1, 128], strides = [1, 1]} : vector<1x512xf32> to vector<1x128xf32>
    %105 = math.tanh %104 : vector<1x128xf32>
    %106 = vector.extract_strided_slice %87 {offsets = [0, 384], sizes = [1, 128], strides = [1, 1]} : vector<1x512xf32> to vector<1x128xf32>
    %cst_44 = arith.constant 5.000000e-01 : f32
    %107 = vector.broadcast %cst_44 : f32 to vector<1x128xf32>
    %108 = arith.mulf %107, %106 : vector<1x128xf32>
    %109 = math.tanh %108 : vector<1x128xf32>
    %cst_45 = arith.constant 1.000000e+00 : f32
    %110 = vector.broadcast %cst_45 : f32 to vector<1x128xf32>
    %111 = arith.addf %109, %110 : vector<1x128xf32>
    %cst_46 = arith.constant 5.000000e-01 : f32
    %112 = vector.broadcast %cst_46 : f32 to vector<1x128xf32>
    %113 = arith.mulf %112, %111 : vector<1x128xf32>
    %114 = arith.mulf %103, %80 : vector<1x128xf32>
    %115 = arith.mulf %95, %105 : vector<1x128xf32>
    %116 = arith.addf %114, %115 : vector<1x128xf32>
    %117 = math.tanh %116 : vector<1x128xf32>
    %118 = arith.mulf %113, %117 : vector<1x128xf32>
    %c3_i32 = arith.constant 3 : i32
    %119 = arith.index_cast %c3_i32 : i32 to index
    %c0_47 = arith.constant 0 : index
    %120 = vector.load %arg7[%119, %c0_47] : memref<8x512xf32, #tpu.memory_space<vmem>>, vector<1x512xf32>
    %c0_48 = arith.constant 0 : index
    %c0_49 = arith.constant 0 : index
    %121 = vector.load %arg2[%c0_48, %c0_49] : memref<128x512xf32, #tpu.memory_space<vmem>>, vector<128x512xf32>
    %cst_50 = arith.constant dense<0.000000e+00> : vector<1x512xf32>
    %122 = tpu.matmul %118, %121, %cst_50 {dimension_numbers = #tpu.dot_dimension_numbers<[1], [0], [0], [1], [0, 0, 1, 1], [], []>} : vector<1x128xf32>, vector<128x512xf32>, vector<1x512xf32> -> vector<1x512xf32>
    %123 = arith.addf %120, %122 : vector<1x512xf32>
    %124 = vector.extract_strided_slice %123 {offsets = [0, 0], sizes = [1, 128], strides = [1, 1]} : vector<1x512xf32> to vector<1x128xf32>
    %cst_51 = arith.constant 5.000000e-01 : f32
    %125 = vector.broadcast %cst_51 : f32 to vector<1x128xf32>
    %126 = arith.mulf %125, %124 : vector<1x128xf32>
    %127 = math.tanh %126 : vector<1x128xf32>
    %cst_52 = arith.constant 1.000000e+00 : f32
    %128 = vector.broadcast %cst_52 : f32 to vector<1x128xf32>
    %129 = arith.addf %127, %128 : vector<1x128xf32>
    %cst_53 = arith.constant 5.000000e-01 : f32
    %130 = vector.broadcast %cst_53 : f32 to vector<1x128xf32>
    %131 = arith.mulf %130, %129 : vector<1x128xf32>
    %132 = vector.extract_strided_slice %123 {offsets = [0, 128], sizes = [1, 128], strides = [1, 1]} : vector<1x512xf32> to vector<1x128xf32>
    %cst_54 = arith.constant 5.000000e-01 : f32
    %133 = vector.broadcast %cst_54 : f32 to vector<1x128xf32>
    %134 = arith.mulf %133, %132 : vector<1x128xf32>
    %135 = math.tanh %134 : vector<1x128xf32>
    %cst_55 = arith.constant 1.000000e+00 : f32
    %136 = vector.broadcast %cst_55 : f32 to vector<1x128xf32>
    %137 = arith.addf %135, %136 : vector<1x128xf32>
    %cst_56 = arith.constant 5.000000e-01 : f32
    %138 = vector.broadcast %cst_56 : f32 to vector<1x128xf32>
    %139 = arith.mulf %138, %137 : vector<1x128xf32>
    %140 = vector.extract_strided_slice %123 {offsets = [0, 256], sizes = [1, 128], strides = [1, 1]} : vector<1x512xf32> to vector<1x128xf32>
    %141 = math.tanh %140 : vector<1x128xf32>
    %142 = vector.extract_strided_slice %123 {offsets = [0, 384], sizes = [1, 128], strides = [1, 1]} : vector<1x512xf32> to vector<1x128xf32>
    %cst_57 = arith.constant 5.000000e-01 : f32
    %143 = vector.broadcast %cst_57 : f32 to vector<1x128xf32>
    %144 = arith.mulf %143, %142 : vector<1x128xf32>
    %145 = math.tanh %144 : vector<1x128xf32>
    %cst_58 = arith.constant 1.000000e+00 : f32
    %146 = vector.broadcast %cst_58 : f32 to vector<1x128xf32>
    %147 = arith.addf %145, %146 : vector<1x128xf32>
    %cst_59 = arith.constant 5.000000e-01 : f32
    %148 = vector.broadcast %cst_59 : f32 to vector<1x128xf32>
    %149 = arith.mulf %148, %147 : vector<1x128xf32>
    %150 = arith.mulf %139, %116 : vector<1x128xf32>
    %151 = arith.mulf %131, %141 : vector<1x128xf32>
    %152 = arith.addf %150, %151 : vector<1x128xf32>
    %153 = math.tanh %152 : vector<1x128xf32>
    %154 = arith.mulf %149, %153 : vector<1x128xf32>
    %c4_i32 = arith.constant 4 : i32
    %155 = arith.index_cast %c4_i32 : i32 to index
    %c0_60 = arith.constant 0 : index
    %156 = vector.load %arg7[%155, %c0_60] : memref<8x512xf32, #tpu.memory_space<vmem>>, vector<1x512xf32>
    %c0_61 = arith.constant 0 : index
    %c0_62 = arith.constant 0 : index
    %157 = vector.load %arg2[%c0_61, %c0_62] : memref<128x512xf32, #tpu.memory_space<vmem>>, vector<128x512xf32>
    %cst_63 = arith.constant dense<0.000000e+00> : vector<1x512xf32>
    %158 = tpu.matmul %154, %157, %cst_63 {dimension_numbers = #tpu.dot_dimension_numbers<[1], [0], [0], [1], [0, 0, 1, 1], [], []>} : vector<1x128xf32>, vector<128x512xf32>, vector<1x512xf32> -> vector<1x512xf32>
    %159 = arith.addf %156, %158 : vector<1x512xf32>
    %160 = vector.extract_strided_slice %159 {offsets = [0, 0], sizes = [1, 128], strides = [1, 1]} : vector<1x512xf32> to vector<1x128xf32>
    %cst_64 = arith.constant 5.000000e-01 : f32
    %161 = vector.broadcast %cst_64 : f32 to vector<1x128xf32>
    %162 = arith.mulf %161, %160 : vector<1x128xf32>
    %163 = math.tanh %162 : vector<1x128xf32>
    %cst_65 = arith.constant 1.000000e+00 : f32
    %164 = vector.broadcast %cst_65 : f32 to vector<1x128xf32>
    %165 = arith.addf %163, %164 : vector<1x128xf32>
    %cst_66 = arith.constant 5.000000e-01 : f32
    %166 = vector.broadcast %cst_66 : f32 to vector<1x128xf32>
    %167 = arith.mulf %166, %165 : vector<1x128xf32>
    %168 = vector.extract_strided_slice %159 {offsets = [0, 128], sizes = [1, 128], strides = [1, 1]} : vector<1x512xf32> to vector<1x128xf32>
    %cst_67 = arith.constant 5.000000e-01 : f32
    %169 = vector.broadcast %cst_67 : f32 to vector<1x128xf32>
    %170 = arith.mulf %169, %168 : vector<1x128xf32>
    %171 = math.tanh %170 : vector<1x128xf32>
    %cst_68 = arith.constant 1.000000e+00 : f32
    %172 = vector.broadcast %cst_68 : f32 to vector<1x128xf32>
    %173 = arith.addf %171, %172 : vector<1x128xf32>
    %cst_69 = arith.constant 5.000000e-01 : f32
    %174 = vector.broadcast %cst_69 : f32 to vector<1x128xf32>
    %175 = arith.mulf %174, %173 : vector<1x128xf32>
    %176 = vector.extract_strided_slice %159 {offsets = [0, 256], sizes = [1, 128], strides = [1, 1]} : vector<1x512xf32> to vector<1x128xf32>
    %177 = math.tanh %176 : vector<1x128xf32>
    %178 = vector.extract_strided_slice %159 {offsets = [0, 384], sizes = [1, 128], strides = [1, 1]} : vector<1x512xf32> to vector<1x128xf32>
    %cst_70 = arith.constant 5.000000e-01 : f32
    %179 = vector.broadcast %cst_70 : f32 to vector<1x128xf32>
    %180 = arith.mulf %179, %178 : vector<1x128xf32>
    %181 = math.tanh %180 : vector<1x128xf32>
    %cst_71 = arith.constant 1.000000e+00 : f32
    %182 = vector.broadcast %cst_71 : f32 to vector<1x128xf32>
    %183 = arith.addf %181, %182 : vector<1x128xf32>
    %cst_72 = arith.constant 5.000000e-01 : f32
    %184 = vector.broadcast %cst_72 : f32 to vector<1x128xf32>
    %185 = arith.mulf %184, %183 : vector<1x128xf32>
    %186 = arith.mulf %175, %152 : vector<1x128xf32>
    %187 = arith.mulf %167, %177 : vector<1x128xf32>
    %188 = arith.addf %186, %187 : vector<1x128xf32>
    %189 = math.tanh %188 : vector<1x128xf32>
    %190 = arith.mulf %185, %189 : vector<1x128xf32>
    %c5_i32 = arith.constant 5 : i32
    %191 = arith.index_cast %c5_i32 : i32 to index
    %c0_73 = arith.constant 0 : index
    %192 = vector.load %arg7[%191, %c0_73] : memref<8x512xf32, #tpu.memory_space<vmem>>, vector<1x512xf32>
    %c0_74 = arith.constant 0 : index
    %c0_75 = arith.constant 0 : index
    %193 = vector.load %arg2[%c0_74, %c0_75] : memref<128x512xf32, #tpu.memory_space<vmem>>, vector<128x512xf32>
    %cst_76 = arith.constant dense<0.000000e+00> : vector<1x512xf32>
    %194 = tpu.matmul %190, %193, %cst_76 {dimension_numbers = #tpu.dot_dimension_numbers<[1], [0], [0], [1], [0, 0, 1, 1], [], []>} : vector<1x128xf32>, vector<128x512xf32>, vector<1x512xf32> -> vector<1x512xf32>
    %195 = arith.addf %192, %194 : vector<1x512xf32>
    %196 = vector.extract_strided_slice %195 {offsets = [0, 0], sizes = [1, 128], strides = [1, 1]} : vector<1x512xf32> to vector<1x128xf32>
    %cst_77 = arith.constant 5.000000e-01 : f32
    %197 = vector.broadcast %cst_77 : f32 to vector<1x128xf32>
    %198 = arith.mulf %197, %196 : vector<1x128xf32>
    %199 = math.tanh %198 : vector<1x128xf32>
    %cst_78 = arith.constant 1.000000e+00 : f32
    %200 = vector.broadcast %cst_78 : f32 to vector<1x128xf32>
    %201 = arith.addf %199, %200 : vector<1x128xf32>
    %cst_79 = arith.constant 5.000000e-01 : f32
    %202 = vector.broadcast %cst_79 : f32 to vector<1x128xf32>
    %203 = arith.mulf %202, %201 : vector<1x128xf32>
    %204 = vector.extract_strided_slice %195 {offsets = [0, 128], sizes = [1, 128], strides = [1, 1]} : vector<1x512xf32> to vector<1x128xf32>
    %cst_80 = arith.constant 5.000000e-01 : f32
    %205 = vector.broadcast %cst_80 : f32 to vector<1x128xf32>
    %206 = arith.mulf %205, %204 : vector<1x128xf32>
    %207 = math.tanh %206 : vector<1x128xf32>
    %cst_81 = arith.constant 1.000000e+00 : f32
    %208 = vector.broadcast %cst_81 : f32 to vector<1x128xf32>
    %209 = arith.addf %207, %208 : vector<1x128xf32>
    %cst_82 = arith.constant 5.000000e-01 : f32
    %210 = vector.broadcast %cst_82 : f32 to vector<1x128xf32>
    %211 = arith.mulf %210, %209 : vector<1x128xf32>
    %212 = vector.extract_strided_slice %195 {offsets = [0, 256], sizes = [1, 128], strides = [1, 1]} : vector<1x512xf32> to vector<1x128xf32>
    %213 = math.tanh %212 : vector<1x128xf32>
    %214 = vector.extract_strided_slice %195 {offsets = [0, 384], sizes = [1, 128], strides = [1, 1]} : vector<1x512xf32> to vector<1x128xf32>
    %cst_83 = arith.constant 5.000000e-01 : f32
    %215 = vector.broadcast %cst_83 : f32 to vector<1x128xf32>
    %216 = arith.mulf %215, %214 : vector<1x128xf32>
    %217 = math.tanh %216 : vector<1x128xf32>
    %cst_84 = arith.constant 1.000000e+00 : f32
    %218 = vector.broadcast %cst_84 : f32 to vector<1x128xf32>
    %219 = arith.addf %217, %218 : vector<1x128xf32>
    %cst_85 = arith.constant 5.000000e-01 : f32
    %220 = vector.broadcast %cst_85 : f32 to vector<1x128xf32>
    %221 = arith.mulf %220, %219 : vector<1x128xf32>
    %222 = arith.mulf %211, %188 : vector<1x128xf32>
    %223 = arith.mulf %203, %213 : vector<1x128xf32>
    %224 = arith.addf %222, %223 : vector<1x128xf32>
    %225 = math.tanh %224 : vector<1x128xf32>
    %226 = arith.mulf %221, %225 : vector<1x128xf32>
    %c6_i32 = arith.constant 6 : i32
    %227 = arith.index_cast %c6_i32 : i32 to index
    %c0_86 = arith.constant 0 : index
    %228 = vector.load %arg7[%227, %c0_86] : memref<8x512xf32, #tpu.memory_space<vmem>>, vector<1x512xf32>
    %c0_87 = arith.constant 0 : index
    %c0_88 = arith.constant 0 : index
    %229 = vector.load %arg2[%c0_87, %c0_88] : memref<128x512xf32, #tpu.memory_space<vmem>>, vector<128x512xf32>
    %cst_89 = arith.constant dense<0.000000e+00> : vector<1x512xf32>
    %230 = tpu.matmul %226, %229, %cst_89 {dimension_numbers = #tpu.dot_dimension_numbers<[1], [0], [0], [1], [0, 0, 1, 1], [], []>} : vector<1x128xf32>, vector<128x512xf32>, vector<1x512xf32> -> vector<1x512xf32>
    %231 = arith.addf %228, %230 : vector<1x512xf32>
    %232 = vector.extract_strided_slice %231 {offsets = [0, 0], sizes = [1, 128], strides = [1, 1]} : vector<1x512xf32> to vector<1x128xf32>
    %cst_90 = arith.constant 5.000000e-01 : f32
    %233 = vector.broadcast %cst_90 : f32 to vector<1x128xf32>
    %234 = arith.mulf %233, %232 : vector<1x128xf32>
    %235 = math.tanh %234 : vector<1x128xf32>
    %cst_91 = arith.constant 1.000000e+00 : f32
    %236 = vector.broadcast %cst_91 : f32 to vector<1x128xf32>
    %237 = arith.addf %235, %236 : vector<1x128xf32>
    %cst_92 = arith.constant 5.000000e-01 : f32
    %238 = vector.broadcast %cst_92 : f32 to vector<1x128xf32>
    %239 = arith.mulf %238, %237 : vector<1x128xf32>
    %240 = vector.extract_strided_slice %231 {offsets = [0, 128], sizes = [1, 128], strides = [1, 1]} : vector<1x512xf32> to vector<1x128xf32>
    %cst_93 = arith.constant 5.000000e-01 : f32
    %241 = vector.broadcast %cst_93 : f32 to vector<1x128xf32>
    %242 = arith.mulf %241, %240 : vector<1x128xf32>
    %243 = math.tanh %242 : vector<1x128xf32>
    %cst_94 = arith.constant 1.000000e+00 : f32
    %244 = vector.broadcast %cst_94 : f32 to vector<1x128xf32>
    %245 = arith.addf %243, %244 : vector<1x128xf32>
    %cst_95 = arith.constant 5.000000e-01 : f32
    %246 = vector.broadcast %cst_95 : f32 to vector<1x128xf32>
    %247 = arith.mulf %246, %245 : vector<1x128xf32>
    %248 = vector.extract_strided_slice %231 {offsets = [0, 256], sizes = [1, 128], strides = [1, 1]} : vector<1x512xf32> to vector<1x128xf32>
    %249 = math.tanh %248 : vector<1x128xf32>
    %250 = vector.extract_strided_slice %231 {offsets = [0, 384], sizes = [1, 128], strides = [1, 1]} : vector<1x512xf32> to vector<1x128xf32>
    %cst_96 = arith.constant 5.000000e-01 : f32
    %251 = vector.broadcast %cst_96 : f32 to vector<1x128xf32>
    %252 = arith.mulf %251, %250 : vector<1x128xf32>
    %253 = math.tanh %252 : vector<1x128xf32>
    %cst_97 = arith.constant 1.000000e+00 : f32
    %254 = vector.broadcast %cst_97 : f32 to vector<1x128xf32>
    %255 = arith.addf %253, %254 : vector<1x128xf32>
    %cst_98 = arith.constant 5.000000e-01 : f32
    %256 = vector.broadcast %cst_98 : f32 to vector<1x128xf32>
    %257 = arith.mulf %256, %255 : vector<1x128xf32>
    %258 = arith.mulf %247, %224 : vector<1x128xf32>
    %259 = arith.mulf %239, %249 : vector<1x128xf32>
    %260 = arith.addf %258, %259 : vector<1x128xf32>
    %261 = math.tanh %260 : vector<1x128xf32>
    %262 = arith.mulf %257, %261 : vector<1x128xf32>
    %c7_i32 = arith.constant 7 : i32
    %263 = arith.index_cast %c7_i32 : i32 to index
    %c0_99 = arith.constant 0 : index
    %264 = vector.load %arg7[%263, %c0_99] : memref<8x512xf32, #tpu.memory_space<vmem>>, vector<1x512xf32>
    %c0_100 = arith.constant 0 : index
    %c0_101 = arith.constant 0 : index
    %265 = vector.load %arg2[%c0_100, %c0_101] : memref<128x512xf32, #tpu.memory_space<vmem>>, vector<128x512xf32>
    %cst_102 = arith.constant dense<0.000000e+00> : vector<1x512xf32>
    %266 = tpu.matmul %262, %265, %cst_102 {dimension_numbers = #tpu.dot_dimension_numbers<[1], [0], [0], [1], [0, 0, 1, 1], [], []>} : vector<1x128xf32>, vector<128x512xf32>, vector<1x512xf32> -> vector<1x512xf32>
    %267 = arith.addf %264, %266 : vector<1x512xf32>
    %268 = vector.extract_strided_slice %267 {offsets = [0, 0], sizes = [1, 128], strides = [1, 1]} : vector<1x512xf32> to vector<1x128xf32>
    %cst_103 = arith.constant 5.000000e-01 : f32
    %269 = vector.broadcast %cst_103 : f32 to vector<1x128xf32>
    %270 = arith.mulf %269, %268 : vector<1x128xf32>
    %271 = math.tanh %270 : vector<1x128xf32>
    %cst_104 = arith.constant 1.000000e+00 : f32
    %272 = vector.broadcast %cst_104 : f32 to vector<1x128xf32>
    %273 = arith.addf %271, %272 : vector<1x128xf32>
    %cst_105 = arith.constant 5.000000e-01 : f32
    %274 = vector.broadcast %cst_105 : f32 to vector<1x128xf32>
    %275 = arith.mulf %274, %273 : vector<1x128xf32>
    %276 = vector.extract_strided_slice %267 {offsets = [0, 128], sizes = [1, 128], strides = [1, 1]} : vector<1x512xf32> to vector<1x128xf32>
    %cst_106 = arith.constant 5.000000e-01 : f32
    %277 = vector.broadcast %cst_106 : f32 to vector<1x128xf32>
    %278 = arith.mulf %277, %276 : vector<1x128xf32>
    %279 = math.tanh %278 : vector<1x128xf32>
    %cst_107 = arith.constant 1.000000e+00 : f32
    %280 = vector.broadcast %cst_107 : f32 to vector<1x128xf32>
    %281 = arith.addf %279, %280 : vector<1x128xf32>
    %cst_108 = arith.constant 5.000000e-01 : f32
    %282 = vector.broadcast %cst_108 : f32 to vector<1x128xf32>
    %283 = arith.mulf %282, %281 : vector<1x128xf32>
    %284 = vector.extract_strided_slice %267 {offsets = [0, 256], sizes = [1, 128], strides = [1, 1]} : vector<1x512xf32> to vector<1x128xf32>
    %285 = math.tanh %284 : vector<1x128xf32>
    %286 = vector.extract_strided_slice %267 {offsets = [0, 384], sizes = [1, 128], strides = [1, 1]} : vector<1x512xf32> to vector<1x128xf32>
    %cst_109 = arith.constant 5.000000e-01 : f32
    %287 = vector.broadcast %cst_109 : f32 to vector<1x128xf32>
    %288 = arith.mulf %287, %286 : vector<1x128xf32>
    %289 = math.tanh %288 : vector<1x128xf32>
    %cst_110 = arith.constant 1.000000e+00 : f32
    %290 = vector.broadcast %cst_110 : f32 to vector<1x128xf32>
    %291 = arith.addf %289, %290 : vector<1x128xf32>
    %cst_111 = arith.constant 5.000000e-01 : f32
    %292 = vector.broadcast %cst_111 : f32 to vector<1x128xf32>
    %293 = arith.mulf %292, %291 : vector<1x128xf32>
    %294 = arith.mulf %283, %260 : vector<1x128xf32>
    %295 = arith.mulf %275, %285 : vector<1x128xf32>
    %296 = arith.addf %294, %295 : vector<1x128xf32>
    %297 = math.tanh %296 : vector<1x128xf32>
    %298 = arith.mulf %293, %297 : vector<1x128xf32>
    %c8_i32 = arith.constant 8 : i32
    %c0_112 = arith.constant 0 : index
    %c0_113 = arith.constant 0 : index
    %299 = vector.load %arg4[%c0_112, %c0_113] : memref<1x128xf32, #tpu.memory_space<vmem>>, vector<1x128xf32>
    %300 = arith.mulf %298, %299 : vector<1x128xf32>
    %cst_114 = arith.constant dense<0.000000e+00> : vector<1xf32>
    %301 = vector.multi_reduction <add>, %300, %cst_114 [1] : vector<1x128xf32> to vector<1xf32>
    %302 = vector.shape_cast %301 : vector<1xf32> to vector<1x1xf32>
    %c0_115 = arith.constant 0 : index
    %c0_116 = arith.constant 0 : index
    %303 = vector.load %arg5[%c0_115, %c0_116] : memref<1x1xf32, #tpu.memory_space<vmem>>, vector<1x1xf32>
    %304 = arith.addf %302, %303 : vector<1x1xf32>
    %c0_117 = arith.constant 0 : index
    %c0_118 = arith.constant 0 : index
    %305 = vector.load %arg6[%c0_117, %c0_118] : memref<1x1xf32, #tpu.memory_space<vmem>>, vector<1x1xf32>
    tpu.vector_store %arg6[%c0_117, %c0_118], %304 {strides = array<i32>} : memref<1x1xf32, #tpu.memory_space<vmem>>, vector<1x1xf32>,
    return
  }
}

</mosaic_0001>

<bundles_post_ra>
// kernel: tpu_custom_call.1
= control target key start
LH: loop header
LB: loop body
LE: loop exit
PB: predicated region body
PF: predicated region fallthrough
CT: control target
= control target key end

     0   :  { %s2877_s0 = inlined_call_operand.vmem [shape: f32[8,1], index: 0, kind: input, shape index: {}]   ;;  %s2878_s1 = inlined_call_operand.vmem [shape: f32[1,512], index: 1, kind: input, shape index: {}]   ;;  %s2879_s2 = inlined_call_operand.hbm [shape: f32[128,512], index: 2, kind: input, shape index: {}]   ;;  %s2880_s3 = inlined_call_operand.vmem [shape: f32[1,512], index: 3, kind: input, shape index: {}]   ;;  %s2881_s4 = inlined_call_operand.vmem [shape: f32[1,128], index: 4, kind: input, shape index: {}]   ;;  %s2882_s5 = inlined_call_operand.<no memory space> [shape: f32[1,1], index: 5, kind: input, shape index: {}]   ;;  %s2883_s6 = inlined_call_operand.hbm [shape: f32[1,1], index: 6, kind: output, shape index: {}]  }
   0x1   :  { %v11_v0 = vstv %s2882_s5 }
   0x2   :  { %12 = vst [vmem:[#allocation3] sm:$0x1] %v11_v0 }
   0x3   :  { %13 = vsyncpa [#allocation5], 0 }
   0x4   :  { %14 = vsyncpa [#allocation6], 0  ;;  %s1978_s23 = smov [#allocation4]  }
   0x5   :  { %s24_s24 = sshll.u32 %s1978_s23, 4  ;;  %s25_s24 = int_to_ptr.vmem [resolvable:$true] %s24_s24 }
   0x6   :  { %s1942_s25 = scalar_lea.vmem %s25_s24, 8192  ;;  %p1947_p1 = scmp.lt.s32.totalorder %s25_s24, %s25_s24 }
   0x7   :  { %p1943_p0 = scmp.ne.s32.totalorder %s25_s24, %s1942_s25  ;;  %p1948_p2 = scmp.lt.s32.totalorder %s1942_s25, %s1942_s25 }
   0x9   :  { %p1949_p3 = por %p1948_p2, %p1947_p1 }
   0xb   :  { %p1950_p4 = pnand %p1949_p3, %p1943_p0 }
   0xd   :  { %1953 = shalt.err (!%p1950_p4)
}
   0xe   :  { %s1979_s26 = smov 512   ;;  %s1980_s27 = smov 32  }
   0xf   :  { %30 = dma.hbm_to_vmem [thread:$0]  %s2879_s2, 8192, %s25_s24, [#allocation5], %s1979_s26, %s1979_s26, %s1980_s27  }
  0x10   :  { %1974 = dma.done.wait [#allocation5], 8192  }
  0x11   :  { %1975 = vsyncadd [#allocation5], 4294959104  ;;  %v2884_v1 = vmov 0.0   ;;  %v1982_v2 = vmov 0   ;;  %v2028_v3 = vld [vmem:[#allocation4 + $0x1e8] sm:$0xff]  ;;  %v2030_v4 = vld [vmem:[#allocation4 + $0x1f8] sm:$0xff] }
  0x12   :  { %231 = vmatprep.mubr.f32.mxu0 %v2884_v1  ;;  %302 = vmatprep.mubr.f32.mxu1 %v2884_v1  ;;  %2981 = vst [vmem:[#allocation10_spill] sm:$0xff] %v2028_v3  ;;  %2982 = vst [vmem:[#allocation11_spill] sm:$0xff] %v2030_v4  ;;  %v2032_v5 = vld [vmem:[#allocation4 + $0x1e0] sm:$0xff]  ;;  %v2036_v6 = vld [vmem:[#allocation4 + $0x1f0] sm:$0xff]  ;;  %vm1759_vm0 = vcmask 1040384   ;;  %s1984_s9 = smov [#allocation7]  }
  0x13   :  { %1789 = vset.pattern.permute.xlu0 %v1982_v2  ;;  %167 = vmatprep.subr.mxu0 %v2028_v3  ;;  %v2038_v7 = vld [vmem:[#allocation4 + $0x1c8] sm:$0xff]  ;;  %v2040_v8 = vld [vmem:[#allocation4 + $0x1d8] sm:$0xff]  ;;  %v2044_v9 = vld [vmem:[#allocation4 + $0x1c0] sm:$0xff]  ;;  %s1773_s10 = sshll.u32 %s1984_s9, 4  ;;  %vm1765_vm1 = vcmask 0   ;;  %s1774_s10 = int_to_ptr.vmem [resolvable:$true] %s1773_s10 }
  0x14   :  { %238 = vmatprep.subr.mxu1 %v2030_v4  ;;  %168 = vmatpush1.msra.mxu0 %v2032_v5  ;;  %v2046_v10 = vld [vmem:[#allocation4 + $0x1d0] sm:$0xff]  ;;  %v2048_v11 = vld [vmem:[#allocation4 + $0x1a8] sm:$0xff]  ;;  %v2052_v12 = vld [vmem:[#allocation4 + $0x1b8] sm:$0xff]  ;;  %s1954_s11 = scalar_lea.vmem %s1774_s10, 16  ;;  %s1958_s12 = scalar_lea.vmem %s1774_s10, 32 }
  0x15   :  { %239 = vmatpush1.msra.mxu1 %v2036_v6  ;;  %169 = vmatprep.subr.mxu0 %v2038_v7  ;;  %v2054_v13 = vld [vmem:[#allocation4 + $0x1a0] sm:$0xff]  ;;  %v2056_v14 = vld [vmem:[#allocation4 + $0x1b0] sm:$0xff]  ;;  %v2060_v15 = vld [vmem:[#allocation4 + $0x188] sm:$0xff]  ;;  %p1955_p5 = scmp.ne.s32.totalorder %s1774_s10, %s1954_s11  ;;  %p1959_p6 = scmp.lt.s32.totalorder %s1774_s10, %s1774_s10 }
  0x16   :  { %240 = vmatprep.subr.mxu1 %v2040_v8  ;;  %170 = vmatpush1.msra.mxu0 %v2044_v9  ;;  %v2062_v16 = vld [vmem:[#allocation4 + $0x198] sm:$0xff]  ;;  %v2066_v17 = vld [vmem:[#allocation4 + $0x180] sm:$0xff]  ;;  %v2068_v18 = vld [vmem:[#allocation4 + $0x190] sm:$0xff]  ;;  %p1960_p7 = scmp.lt.s32.totalorder %s1958_s12, %s1954_s11 }
  0x17   :  { %241 = vmatpush1.msra.mxu1 %v2046_v10  ;;  %171 = vmatprep.subr.mxu0 %v2048_v11  ;;  %v2072_v19 = vld [vmem:[#allocation4 + $0x168] sm:$0xff]  ;;  %v2074_v20 = vld [vmem:[#allocation4 + $0x178] sm:$0xff]  ;;  %v2078_v21 = vld [vmem:[#allocation4 + $0x160] sm:$0xff] }
  0x18   :  { %242 = vmatprep.subr.mxu1 %v2052_v12  ;;  %172 = vmatpush1.msra.mxu0 %v2054_v13  ;;  %v2080_v22 = vld [vmem:[#allocation4 + $0x170] sm:$0xff]  ;;  %v2084_v23 = vld [vmem:[#allocation4 + $0x148] sm:$0xff]  ;;  %v2086_v24 = vld [vmem:[#allocation4 + $0x158] sm:$0xff]  ;;  %p1961_p8 = por %p1960_p7, %p1959_p6 }
  0x19   :  { %243 = vmatpush1.msra.mxu1 %v2056_v14  ;;  %173 = vmatprep.subr.mxu0 %v2060_v15  ;;  %v2090_v25 = vld [vmem:[#allocation4 + $0x140] sm:$0xff]  ;;  %v2092_v26 = vld [vmem:[#allocation4 + $0x150] sm:$0xff]  ;;  %v2096_v27 = vld [vmem:[#allocation4 + $0x128] sm:$0xff] }
  0x1a   :  { %244 = vmatprep.subr.mxu1 %v2062_v16  ;;  %174 = vmatpush1.msra.mxu0 %v2066_v17  ;;  %v2098_v28 = vld [vmem:[#allocation4 + $0x138] sm:$0xff]  ;;  %v2102_v29 = vld [vmem:[#allocation4 + $0x120] sm:$0xff]  ;;  %v2104_v30 = vld [vmem:[#allocation4 + $0x130] sm:$0xff]  ;;  %p1962_p9 = pnand %p1961_p8, %p1955_p5 }
  0x1b   :  { %245 = vmatpush1.msra.mxu1 %v2068_v18  ;;  %175 = vmatprep.subr.mxu0 %v2072_v19  ;;  %v2108_v31 = vld [vmem:[#allocation4 + $0x108] sm:$0xff]  ;;  %v2110_v32 = vld [vmem:[#allocation4 + $0x118] sm:$0xff]  ;;  %v2114_v33 = vld [vmem:[#allocation4 + $0x100] sm:$0xff] }
  0x1c   :  { %246 = vmatprep.subr.mxu1 %v2074_v20  ;;  %176 = vmatpush1.msra.mxu0 %v2078_v21  ;;  %v2116_v34 = vld [vmem:[#allocation4 + $0x110] sm:$0xff]  ;;  %v2120_v35 = vld [vmem:[#allocation4 + $0xe8] sm:$0xff]  ;;  %v2122_v36 = vld [vmem:[#allocation4 + $0xf8] sm:$0xff] }
  0x1d   :  { %247 = vmatpush1.msra.mxu1 %v2080_v22  ;;  %177 = vmatprep.subr.mxu0 %v2084_v23  ;;  %v2126_v37 = vld [vmem:[#allocation4 + $0xe0] sm:$0xff]  ;;  %v2128_v38 = vld [vmem:[#allocation4 + $0xf0] sm:$0xff]  ;;  %v2132_v39 = vld [vmem:[#allocation4 + $0xc8] sm:$0xff] }
  0x1e   :  { %248 = vmatprep.subr.mxu1 %v2086_v24  ;;  %178 = vmatpush1.msra.mxu0 %v2090_v25  ;;  %v2134_v40 = vld [vmem:[#allocation4 + $0xd8] sm:$0xff]  ;;  %v2138_v41 = vld [vmem:[#allocation4 + $0xc0] sm:$0xff]  ;;  %v2140_v42 = vld [vmem:[#allocation4 + $0xd0] sm:$0xff] }
  0x1f   :  { %249 = vmatpush1.msra.mxu1 %v2092_v26  ;;  %179 = vmatprep.subr.mxu0 %v2096_v27  ;;  %v2144_v43 = vld [vmem:[#allocation4 + $0xa8] sm:$0xff]  ;;  %v2146_v44 = vld [vmem:[#allocation4 + $0xb8] sm:$0xff]  ;;  %v2150_v45 = vld [vmem:[#allocation4 + $0xa0] sm:$0xff] }
  0x20   :  { %250 = vmatprep.subr.mxu1 %v2098_v28  ;;  %180 = vmatpush1.msra.mxu0 %v2102_v29  ;;  %2983 = vst [vmem:[#allocation12_spill] sm:$0xff] %v2144_v43  ;;  %2984 = vst [vmem:[#allocation13_spill] sm:$0xff] %v2146_v44  ;;  %v2152_v46 = vld [vmem:[#allocation4 + $0xb0] sm:$0xff]  ;;  %v2156_v47 = vld [vmem:[#allocation4 + $0x88] sm:$0xff] }
  0x21   :  { %251 = vmatpush1.msra.mxu1 %v2104_v30  ;;  %181 = vmatprep.subr.mxu0 %v2108_v31  ;;  %2985 = vst [vmem:[#allocation14_spill] sm:$0xff] %v2150_v45  ;;  %2986 = vst [vmem:[#allocation15_spill] sm:$0xff] %v2152_v46  ;;  %v2158_v48 = vld [vmem:[#allocation4 + $0x98] sm:$0xff]  ;;  %v2162_v49 = vld [vmem:[#allocation4 + $0x80] sm:$0xff] }
  0x22   :  { %252 = vmatprep.subr.mxu1 %v2110_v32  ;;  %182 = vmatpush1.msra.mxu0 %v2114_v33  ;;  %2987 = vst [vmem:[#allocation16_spill] sm:$0xff] %v2156_v47  ;;  %2988 = vst [vmem:[#allocation17_spill] sm:$0xff] %v2158_v48  ;;  %v2164_v50 = vld [vmem:[#allocation4 + $0x90] sm:$0xff]  ;;  %v2168_v51 = vld [vmem:[#allocation4 + $0x68] sm:$0xff] }
  0x23   :  { %253 = vmatpush1.msra.mxu1 %v2116_v34  ;;  %183 = vmatprep.subr.mxu0 %v2120_v35  ;;  %2989 = vst [vmem:[#allocation18_spill] sm:$0xff] %v2162_v49  ;;  %2990 = vst [vmem:[#allocation19_spill] sm:$0xff] %v2164_v50  ;;  %v2170_v52 = vld [vmem:[#allocation4 + $0x78] sm:$0xff]  ;;  %v2174_v53 = vld [vmem:[#allocation4 + $0x60] sm:$0xff] }
  0x24   :  { %254 = vmatprep.subr.mxu1 %v2122_v36  ;;  %184 = vmatpush1.msra.mxu0 %v2126_v37  ;;  %2991 = vst [vmem:[#allocation20_spill] sm:$0xff] %v2168_v51  ;;  %2992 = vst [vmem:[#allocation21_spill] sm:$0xff] %v2170_v52  ;;  %v2176_v54 = vld [vmem:[#allocation4 + $0x70] sm:$0xff]  ;;  %v2180_v55 = vld [vmem:[#allocation4 + $0x48] sm:$0xff] }
  0x25   :  { %255 = vmatpush1.msra.mxu1 %v2128_v38  ;;  %185 = vmatprep.subr.mxu0 %v2132_v39  ;;  %2993 = vst [vmem:[#allocation22_spill] sm:$0xff] %v2174_v53  ;;  %2994 = vst [vmem:[#allocation23_spill] sm:$0xff] %v2176_v54  ;;  %v2182_v56 = vld [vmem:[#allocation4 + $0x58] sm:$0xff]  ;;  %v2186_v57 = vld [vmem:[#allocation4 + $0x40] sm:$0xff] }
  0x26   :  { %256 = vmatprep.subr.mxu1 %v2134_v40  ;;  %186 = vmatpush1.msra.mxu0 %v2138_v41  ;;  %2995 = vst [vmem:[#allocation24_spill] sm:$0xff] %v2180_v55  ;;  %2996 = vst [vmem:[#allocation25_spill] sm:$0xff] %v2182_v56  ;;  %v2188_v58 = vld [vmem:[#allocation4 + $0x50] sm:$0xff]  ;;  %v2192_v59 = vld [vmem:[#allocation4 + $0x28] sm:$0xff] }
  0x27   :  { %257 = vmatpush1.msra.mxu1 %v2140_v42  ;;  %187 = vmatprep.subr.mxu0 %v2144_v43  ;;  %2997 = vst [vmem:[#allocation26_spill] sm:$0xff] %v2186_v57  ;;  %2998 = vst [vmem:[#allocation27_spill] sm:$0xff] %v2188_v58  ;;  %v2194_v60 = vld [vmem:[#allocation4 + $0x38] sm:$0xff]  ;;  %v2198_v61 = vld [vmem:[#allocation4 + $0x20] sm:$0xff] }
  0x28   :  { %258 = vmatprep.subr.mxu1 %v2146_v44  ;;  %188 = vmatpush1.msra.mxu0 %v2150_v45  ;;  %2999 = vst [vmem:[#allocation28_spill] sm:$0xff] %v2192_v59  ;;  %3000 = vst [vmem:[#allocation29_spill] sm:$0xff] %v2194_v60  ;;  %v2200_v62 = vld [vmem:[#allocation4 + $0x30] sm:$0xff]  ;;  %v2204_v63 = vld [vmem:[#allocation4 + $0x8] sm:$0xff] }
  0x29   :  { %259 = vmatpush1.msra.mxu1 %v2152_v46  ;;  %189 = vmatprep.subr.mxu0 %v2156_v47  ;;  %3001 = vst [vmem:[#allocation30_spill] sm:$0xff] %v2198_v61  ;;  %3002 = vst [vmem:[#allocation31_spill] sm:$0xff] %v2200_v62  ;;  %v2206_v0 = vld [vmem:[#allocation4 + $0x18] sm:$0xff]  ;;  %v2210_v2 = vld [vmem:[#allocation4] sm:$0xff] }
  0x2a   :  { %260 = vmatprep.subr.mxu1 %v2158_v48  ;;  %190 = vmatpush1.msra.mxu0 %v2162_v49  ;;  %3003 = vst [vmem:[#allocation32_spill] sm:$0xff] %v2204_v63  ;;  %3004 = vst [vmem:[#allocation33_spill] sm:$0xff] %v2206_v0  ;;  %v2212_v1 = vld [vmem:[#allocation4 + $0x10] sm:$0xff] }
  0x2b   :  { %261 = vmatpush1.msra.mxu1 %v2164_v50  ;;  %191 = vmatprep.subr.mxu0 %v2168_v51  ;;  %3005 = vst [vmem:[#allocation34_spill] sm:$0xff] %v2210_v2  ;;  %3006 = vst [vmem:[#allocation35_spill] sm:$0xff] %v2212_v1 }
  0x2c   :  { %262 = vmatprep.subr.mxu1 %v2170_v52  ;;  %192 = vmatpush1.msra.mxu0 %v2174_v53 }
  0x2d   :  { %263 = vmatpush1.msra.mxu1 %v2176_v54  ;;  %193 = vmatprep.subr.mxu0 %v2180_v55 }
  0x2e   :  { %264 = vmatprep.subr.mxu1 %v2182_v56  ;;  %194 = vmatpush1.msra.mxu0 %v2186_v57 }
  0x2f   :  { %265 = vmatpush1.msra.mxu1 %v2188_v58  ;;  %195 = vmatprep.subr.mxu0 %v2192_v59  ;;  %v40_v58 = vld [vmem:[%s2877_s0] sm:$0xff] }
  0x30   :  { %266 = vmatprep.subr.mxu1 %v2194_v60  ;;  %196 = vmatpush1.msra.mxu0 %v2198_v61  ;;  %v3007_v60 = vmov 0.0  }
  0x31   :  { %267 = vmatpush1.msra.mxu1 %v2200_v62  ;;  %197 = vmatprep.subr.mxu0 %v2204_v63 }
  0x32   :  { %268 = vmatprep.subr.mxu1 %v2206_v0  ;;  %198 = vmatpush1.msra.mxu0 %v2210_v2 }
  0x33   :  { %269 = vmatpush1.msra.mxu1 %v2212_v1  ;;  %232 = vmatmul.mubr.f32.vlgmr.msra.gmra.mxu0 %v3007_v60 }
  0x34   :  { %303 = vmatmul.mubr.f32.vlgmr.msra.gmra.mxu1 %v3007_v60  ;;  %44 = vperm.xlu0 %1789, %v40_v58   ;;  %v3008_v58 = vld [vmem:[#allocation27_spill] sm:$0xff] }
  0x35   :  { %366 = vmatprep.subr.mxu0 %v2028_v3  ;;  %437 = vmatprep.subr.mxu1 %v2030_v4 }
  0x36   :  { %367 = vmatpush1.msra.mxu0 %v2032_v5  ;;  %438 = vmatpush1.msra.mxu1 %v2036_v6 }
  0x37   :  { %368 = vmatprep.subr.mxu0 %v2038_v7  ;;  %439 = vmatprep.subr.mxu1 %v2040_v8 }
  0x38   :  { %369 = vmatpush1.msra.mxu0 %v2044_v9  ;;  %440 = vmatpush1.msra.mxu1 %v2046_v10 }
  0x39   :  { %370 = vmatprep.subr.mxu0 %v2048_v11  ;;  %441 = vmatprep.subr.mxu1 %v2052_v12 }
  0x3a   :  { %371 = vmatpush1.msra.mxu0 %v2054_v13  ;;  %442 = vmatpush1.msra.mxu1 %v2056_v14 }
  0x3b   :  { %372 = vmatprep.subr.mxu0 %v2060_v15  ;;  %443 = vmatprep.subr.mxu1 %v2062_v16 }
  0x3c   :  { %373 = vmatpush1.msra.mxu0 %v2066_v17  ;;  %444 = vmatpush1.msra.mxu1 %v2068_v18 }
  0x3d   :  { %374 = vmatprep.subr.mxu0 %v2072_v19  ;;  %445 = vmatprep.subr.mxu1 %v2074_v20 }
  0x3e   :  { %375 = vmatpush1.msra.mxu0 %v2078_v21  ;;  %446 = vmatpush1.msra.mxu1 %v2080_v22 }
  0x3f   :  { %376 = vmatprep.subr.mxu0 %v2084_v23  ;;  %447 = vmatprep.subr.mxu1 %v2086_v24 }
  0x40   :  { %377 = vmatpush1.msra.mxu0 %v2090_v25  ;;  %448 = vmatpush1.msra.mxu1 %v2092_v26 }
  0x41   :  { %378 = vmatprep.subr.mxu0 %v2096_v27  ;;  %449 = vmatprep.subr.mxu1 %v2098_v28 }
  0x42   :  { %379 = vmatpush1.msra.mxu0 %v2102_v29  ;;  %450 = vmatpush1.msra.mxu1 %v2104_v30 }
  0x43   :  { %380 = vmatprep.subr.mxu0 %v2108_v31  ;;  %451 = vmatprep.subr.mxu1 %v2110_v32 }
  0x44   :  { %381 = vmatpush1.msra.mxu0 %v2114_v33  ;;  %452 = vmatpush1.msra.mxu1 %v2116_v34 }
  0x45   :  { %382 = vmatprep.subr.mxu0 %v2120_v35  ;;  %453 = vmatprep.subr.mxu1 %v2122_v36 }
  0x46   :  { %383 = vmatpush1.msra.mxu0 %v2126_v37  ;;  %454 = vmatpush1.msra.mxu1 %v2128_v38 }
  0x47   :  { %384 = vmatprep.subr.mxu0 %v2132_v39  ;;  %455 = vmatprep.subr.mxu1 %v2134_v40 }
  0x48   :  { %385 = vmatpush1.msra.mxu0 %v2138_v41  ;;  %456 = vmatpush1.msra.mxu1 %v2140_v42 }
  0x49   :  { %386 = vmatprep.subr.mxu0 %v2144_v43  ;;  %457 = vmatprep.subr.mxu1 %v2146_v44  ;;  %v1983_v44 = vmov 1966171168  }
  0x4a   :  { %387 = vmatpush1.msra.mxu0 %v2150_v45  ;;  %458 = vmatpush1.msra.mxu1 %v2152_v46  ;;  %v316_v43 = vunpack.c.l.s4 %v1983_v44 }
  0x4b   :  { %388 = vmatprep.subr.mxu0 %v2156_v47  ;;  %459 = vmatprep.subr.mxu1 %v2158_v48 }
  0x4c   :  { %389 = vmatpush1.msra.mxu0 %v2162_v49  ;;  %460 = vmatpush1.msra.mxu1 %v2164_v50  ;;  %v3009_v49 = vld [vmem:[#allocation29_spill] sm:$0xff] }
  0x4d   :  { %390 = vmatprep.subr.mxu0 %v2168_v51  ;;  %461 = vmatprep.subr.mxu1 %v2170_v52 }
  0x4e   :  { %391 = vmatpush1.msra.mxu0 %v2174_v53  ;;  %462 = vmatpush1.msra.mxu1 %v2176_v54 }
  0x4f   :  { %392 = vmatprep.subr.mxu0 %v2180_v55  ;;  %463 = vmatprep.subr.mxu1 %v2182_v56 }
  0x50   :  { %393 = vmatpush1.msra.mxu0 %v2186_v57  ;;  %464 = vmatpush1.msra.mxu1 %v3008_v58 }
  0x51   :  { %394 = vmatprep.subr.mxu0 %v2192_v59  ;;  %465 = vmatprep.subr.mxu1 %v3009_v49  ;;  %v48_v49 = vlaneseq }
  0x52   :  { %395 = vmatpush1.msra.mxu0 %v2198_v61  ;;  %466 = vmatpush1.msra.mxu1 %v2200_v62 }
  0x53   :  { %396 = vmatprep.subr.mxu0 %v2204_v63  ;;  %467 = vmatprep.subr.mxu1 %v2206_v0  ;;  %v49_v61 = vshrl.u32 %v48_v49, 7 }
  0x54   :  { %397 = vmatpush1.msra.mxu0 %v2210_v2  ;;  %430 = vmatprep.mubr.f32.mxu0 %v3007_v60  ;;  %v41_v2 = vld [vmem:[%s2878_s1] sm:$0xf] }
  0x55   :  { %468 = vmatpush1.msra.mxu1 %v2212_v1  ;;  %501 = vmatprep.mubr.f32.mxu1 %v3007_v60  ;;  %v50_v59 = vsub.s32 0, %v49_v61  ;;  %v54_v62 = vsub.s32 1, %v49_v61  ;;  %v58_v58 = vsub.s32 2, %v49_v61  ;;  %v62_v63 = vsub.s32 3, %v49_v61  ;;  %v72_v1 = vld [vmem:[%s2880_s3] sm:$0xf] }
  0x56   :  { %565 = vmatprep.subr.mxu0 %v2028_v3  ;;  %636 = vmatprep.subr.mxu1 %v2030_v4 }
  0x57   :  { %v51_v0 = vrot.slane %v41_v2, %v50_v59  ;;  %v55_v60 = vrot.slane %v41_v2, %v54_v62  ;;  %v59_v57 = vrot.slane %v41_v2, %v58_v58  ;;  %v63_v3 = vrot.slane %v41_v2, %v62_v63 }
  0x58   :  { %v77_v56 = vrot.slane %v72_v1, %v50_v59  ;;  %v81_v4 = vrot.slane %v72_v1, %v54_v62  ;;  %v85_v55 = vrot.slane %v72_v1, %v58_v58  ;;  %v89_v49 = vrot.slane %v72_v1, %v62_v63 }
  0x59   :  { %v317_v2 = vunpack.c.0.s8 %v316_v43 }
  0x5b   :  { %v2299_v58 = vsub.s32 %v317_v2, %v49_v61 }
  0xaf   :  { %v45_v54 = vpop.permute.xlu0 %44 }
  0xb0   :  { %v68_v53 = vmul.f32 %v51_v0, %v45_v54  ;;  %v69_v52 = vmul.f32 %v55_v60, %v45_v54  ;;  %v70_v51 = vmul.f32 %v59_v57, %v45_v54  ;;  %v71_v50 = vmul.f32 %v63_v3, %v45_v54 }
  0xb2   :  { %v94_v48 = vadd.f32 %v77_v56, %v68_v53  ;;  %v95_v47 = vadd.f32 %v81_v4, %v69_v52  ;;  %v96_v46 = vadd.f32 %v85_v55, %v70_v51  ;;  %v97_v45 = vadd.f32 %v89_v49, %v71_v50 }
  0xb4   :  { %98 = vst [vmem:[#allocation2] sm:$0xff] %v94_v48  ;;  %99 = vst [vmem:[#allocation2 + $0x8] sm:$0xff] %v95_v47 }
  0xb5   :  { %100 = vst [vmem:[#allocation2 + $0x10] sm:$0xff] %v96_v46  ;;  %101 = vst [vmem:[#allocation2 + $0x18] sm:$0xff] %v97_v45 }
  0xbc   :  { %v102_v48 = vld [vmem:[#allocation2] ss:$8 sm:$0xf] }
  0xf3   :  { %v233_v59 = vpop.f32.mrf.mxu0 }
  0xf4   :  { %v304_v62 = vpop.f32.mrf.mxu1 }
  0xf5   :  { %v235_v1 = vpop.f32.mrf.mxu0 }
  0xf6   :  { %v306_v63 = vpop.f32.mrf.mxu1  ;;  %v313_v60 = vcombine.low %v233_v59, %v235_v1 }
  0xf7   :  { %v314_v57 = vcombine.low %v304_v62, %v306_v63 }
  0xf8   :  { %v321_v3 = vrot.slane %v313_v60, %v2299_v58 }
  0xf9   :  { %v328_v4 = vrot.slane %v314_v57, %v2299_v58 }
  0xfb   :  { %v329_v50 = vcombine.low %v321_v3, %v328_v4 }
  0xfd   :  { %v336_v46 = vrot.slane %v329_v50, %v2299_v58  ;;  %v3010_v50 = vld [vmem:[#allocation12_spill] sm:$0xff] }
  0xff   :  { %v338_v45 = vadd.f32 %v336_v46, %v102_v48  ;;  %v3011_v48 = vld [vmem:[#allocation13_spill] sm:$0xff]  ;;  %v3012_v46 = vld [vmem:[#allocation14_spill] sm:$0xff] }
 0x101   :  { %v339_v47 = vmul.f32 0.5, %v338_v45  ;;  %v344_v44 = vrot.slane %v338_v45, 1  ;;  %v350_v51 = vrot.slane %v338_v45, 2  ;;  %v353_v52 = vrot.slane %v338_v45, 3  ;;  %v3013_v45 = vld [vmem:[#allocation15_spill] sm:$0xff] }
 0x103   :  { %1790 = vtanh.f32 %v339_v47  ;;  %v346_v43 = vmul.f32 0.5, %v344_v44  ;;  %v355_v53 = vmul.f32 0.5, %v353_v52  ;;  %v3014_v47 = vld [vmem:[#allocation16_spill] sm:$0xff]  ;;  %v3015_v44 = vld [vmem:[#allocation17_spill] sm:$0xff] }
 0x104   :  { %v3018_v52 = vld [vmem:[#allocation20_spill] sm:$0xff] }
 0x105   :  { %1792 = vtanh.f32 %v346_v43  ;;  %v3016_v43 = vld [vmem:[#allocation18_spill] sm:$0xff] }
 0x106   :  { %1794 = vtanh.f32 %v350_v51  ;;  %v3017_v51 = vld [vmem:[#allocation19_spill] sm:$0xff] }
 0x107   :  { %1796 = vtanh.f32 %v355_v53  ;;  %v3019_v53 = vld [vmem:[#allocation21_spill] sm:$0xff] }
 0x110   :  { %v1791_v54 = vpop.eup %1790 }
 0x111   :  { %v341_v55 = vadd.f32 1.0, %v1791_v54  ;;  %v3020_v54 = vld [vmem:[#allocation22_spill] sm:$0xff] }
 0x112   :  { %v1793_v56 = vpop.eup %1792 }
 0x113   :  { %v342_v61 = vmul.f32 0.5, %v341_v55  ;;  %v348_v0 = vadd.f32 1.0, %v1793_v56  ;;  %v1795_v2 = vpop.eup %1794  ;;  %v3021_v55 = vld [vmem:[#allocation23_spill] sm:$0xff]  ;;  %v3022_v56 = vld [vmem:[#allocation24_spill] sm:$0xff] }
 0x114   :  { %v1797_v63 = vpop.eup %1796 }
 0x115   :  { %v349_v49 = vmul.f32 0.5, %v348_v0  ;;  %v360_v62 = vmul.f32 %v1795_v2, %v342_v61  ;;  %v357_v60 = vadd.f32 1.0, %v1797_v63  ;;  %v3023_v61 = vld [vmem:[#allocation25_spill] sm:$0xff]  ;;  %v3024_v0 = vld [vmem:[#allocation26_spill] sm:$0xff]  ;;  %v3026_v2 = vld [vmem:[#allocation28_spill] sm:$0xff] }
 0x116   :  { %v3029_v63 = vld [vmem:[#allocation31_spill] sm:$0xff] }
 0x117   :  { %v359_v59 = vmul.f32 0.0, %v349_v49  ;;  %v358_v57 = vmul.f32 0.5, %v357_v60  ;;  %v3025_v49 = vld [vmem:[#allocation27_spill] sm:$0xff]  ;;  %v3030_v60 = vld [vmem:[#allocation32_spill] sm:$0xff] }
 0x119   :  { %v2304_v1 = vadd.f32 %v360_v62, %v359_v59  ;;  %v3027_v59 = vld [vmem:[#allocation29_spill] sm:$0xff]  ;;  %v3028_v62 = vld [vmem:[#allocation30_spill] sm:$0xff] }
 0x11b   :  { %1798 = vtanh.f32 %v2304_v1 }
 0x128   :  { %v1799_v3 = vpop.eup %1798 }
 0x129   :  { %v363_v4 = vmul.f32 %v1799_v3, %v358_v57  ;;  %v3031_v57 = vld [vmem:[#allocation33_spill] sm:$0xff]  ;;  %v3032_v3 = vld [vmem:[#allocation34_spill] sm:$0xff] }
 0x12b   :  { %431 = vmatmul.mubr.f32.vlgmr.msra.gmra.mxu0 %v363_v4  ;;  %502 = vmatmul.mubr.f32.vlgmr.msra.gmra.mxu1 %v363_v4  ;;  %v3033_v4 = vmov 0.0  }
 0x12c   :  { %566 = vmatpush1.msra.mxu0 %v2032_v5  ;;  %637 = vmatpush1.msra.mxu1 %v2036_v6 }
 0x12d   :  { %567 = vmatprep.subr.mxu0 %v2038_v7  ;;  %638 = vmatprep.subr.mxu1 %v2040_v8 }
 0x12e   :  { %568 = vmatpush1.msra.mxu0 %v2044_v9  ;;  %639 = vmatpush1.msra.mxu1 %v2046_v10 }
 0x12f   :  { %569 = vmatprep.subr.mxu0 %v2048_v11  ;;  %640 = vmatprep.subr.mxu1 %v2052_v12 }
 0x130   :  { %570 = vmatpush1.msra.mxu0 %v2054_v13  ;;  %641 = vmatpush1.msra.mxu1 %v2056_v14 }
 0x131   :  { %571 = vmatprep.subr.mxu0 %v2060_v15  ;;  %642 = vmatprep.subr.mxu1 %v2062_v16 }
 0x132   :  { %572 = vmatpush1.msra.mxu0 %v2066_v17  ;;  %643 = vmatpush1.msra.mxu1 %v2068_v18 }
 0x133   :  { %573 = vmatprep.subr.mxu0 %v2072_v19  ;;  %644 = vmatprep.subr.mxu1 %v2074_v20 }
 0x134   :  { %574 = vmatpush1.msra.mxu0 %v2078_v21  ;;  %645 = vmatpush1.msra.mxu1 %v2080_v22 }
 0x135   :  { %575 = vmatprep.subr.mxu0 %v2084_v23  ;;  %646 = vmatprep.subr.mxu1 %v2086_v24 }
 0x136   :  { %576 = vmatpush1.msra.mxu0 %v2090_v25  ;;  %647 = vmatpush1.msra.mxu1 %v2092_v26 }
 0x137   :  { %577 = vmatprep.subr.mxu0 %v2096_v27  ;;  %648 = vmatprep.subr.mxu1 %v2098_v28 }
 0x138   :  { %578 = vmatpush1.msra.mxu0 %v2102_v29  ;;  %649 = vmatpush1.msra.mxu1 %v2104_v30 }
 0x139   :  { %579 = vmatprep.subr.mxu0 %v2108_v31  ;;  %650 = vmatprep.subr.mxu1 %v2110_v32 }
 0x13a   :  { %580 = vmatpush1.msra.mxu0 %v2114_v33  ;;  %651 = vmatpush1.msra.mxu1 %v2116_v34 }
 0x13b   :  { %581 = vmatprep.subr.mxu0 %v2120_v35  ;;  %652 = vmatprep.subr.mxu1 %v2122_v36 }
 0x13c   :  { %582 = vmatpush1.msra.mxu0 %v2126_v37  ;;  %653 = vmatpush1.msra.mxu1 %v2128_v38 }
 0x13d   :  { %583 = vmatprep.subr.mxu0 %v2132_v39  ;;  %654 = vmatprep.subr.mxu1 %v2134_v40 }
 0x13e   :  { %584 = vmatpush1.msra.mxu0 %v2138_v41  ;;  %655 = vmatpush1.msra.mxu1 %v2140_v42 }
 0x13f   :  { %585 = vmatprep.subr.mxu0 %v3010_v50  ;;  %656 = vmatprep.subr.mxu1 %v3011_v48 }
 0x140   :  { %586 = vmatpush1.msra.mxu0 %v3012_v46  ;;  %657 = vmatpush1.msra.mxu1 %v3013_v45 }
 0x141   :  { %587 = vmatprep.subr.mxu0 %v3014_v47  ;;  %658 = vmatprep.subr.mxu1 %v3015_v44 }
 0x142   :  { %588 = vmatpush1.msra.mxu0 %v3016_v43  ;;  %659 = vmatpush1.msra.mxu1 %v3017_v51 }
 0x143   :  { %589 = vmatprep.subr.mxu0 %v3018_v52  ;;  %660 = vmatprep.subr.mxu1 %v3019_v53 }
 0x144   :  { %590 = vmatpush1.msra.mxu0 %v3020_v54  ;;  %661 = vmatpush1.msra.mxu1 %v3021_v55 }
 0x145   :  { %591 = vmatprep.subr.mxu0 %v3022_v56  ;;  %662 = vmatprep.subr.mxu1 %v3023_v61  ;;  %v3034_v61 = vld [vmem:[#allocation35_spill] sm:$0xff] }
 0x146   :  { %592 = vmatpush1.msra.mxu0 %v3024_v0  ;;  %663 = vmatpush1.msra.mxu1 %v3025_v49  ;;  %v3035_v49 = vld [vmem:[#allocation10_spill] sm:$0xff] }
 0x147   :  { %593 = vmatprep.subr.mxu0 %v3026_v2  ;;  %664 = vmatprep.subr.mxu1 %v3027_v59  ;;  %v3036_v2 = vld [vmem:[#allocation11_spill] sm:$0xff] }
 0x148   :  { %594 = vmatpush1.msra.mxu0 %v3028_v62  ;;  %665 = vmatpush1.msra.mxu1 %v3029_v63 }
 0x149   :  { %595 = vmatprep.subr.mxu0 %v3030_v60  ;;  %666 = vmatprep.subr.mxu1 %v3031_v57 }
 0x14a   :  { %596 = vmatpush1.msra.mxu0 %v3032_v3  ;;  %629 = vmatprep.mubr.f32.mxu0 %v3033_v4 }
 0x14b   :  { %667 = vmatpush1.msra.mxu1 %v3034_v61  ;;  %700 = vmatprep.mubr.f32.mxu1 %v3033_v4  ;;  %v365_v61 = vld [vmem:[#allocation2 + $0x1] ss:$8 sm:$0xf] }
 0x14c   :  { %764 = vmatprep.subr.mxu0 %v3035_v49  ;;  %835 = vmatprep.subr.mxu1 %v3036_v2 }
 0x1eb   :  { %v432_v59 = vpop.f32.mrf.mxu0  ;;  %v503_v62 = vpop.f32.mrf.mxu1 }
 0x1ed   :  { %v434_v0 = vpop.f32.mrf.mxu0  ;;  %v505_v63 = vpop.f32.mrf.mxu1 }
 0x1ee   :  { %v512_v56 = vcombine.low %v432_v59, %v434_v0  ;;  %v513_v60 = vcombine.low %v503_v62, %v505_v63 }
 0x1f0   :  { %v520_v57 = vrot.slane %v512_v56, %v2299_v58  ;;  %v527_v3 = vrot.slane %v513_v60, %v2299_v58 }
 0x1f2   :  { %v528_v55 = vcombine.low %v520_v57, %v527_v3  ;;  %v3039_v3 = vld [vmem:[#allocation20_spill] sm:$0xff] }
 0x1f4   :  { %v535_v54 = vrot.slane %v528_v55, %v2299_v58 }
 0x1f6   :  { %v537_v53 = vadd.f32 %v535_v54, %v365_v61 }
 0x1f8   :  { %v538_v4 = vmul.f32 0.5, %v537_v53  ;;  %v543_v52 = vrot.slane %v537_v53, 1  ;;  %v549_v2 = vrot.slane %v537_v53, 2  ;;  %v552_v51 = vrot.slane %v537_v53, 3 }
 0x1fa   :  { %1800 = vtanh.f32 %v538_v4  ;;  %v545_v49 = vmul.f32 0.5, %v543_v52  ;;  %v554_v43 = vmul.f32 0.5, %v552_v51  ;;  %v3040_v4 = vld [vmem:[#allocation21_spill] sm:$0xff] }
 0x1fc   :  { %1802 = vtanh.f32 %v545_v49 }
 0x1fd   :  { %1804 = vtanh.f32 %v549_v2 }
 0x1fe   :  { %1806 = vtanh.f32 %v554_v43  ;;  %v3038_v43 = vld [vmem:[#allocation19_spill] sm:$0xff] }
 0x207   :  { %v1801_v0 = vpop.eup %1800 }
 0x208   :  { %v540_v59 = vadd.f32 1.0, %v1801_v0  ;;  %v3041_v0 = vld [vmem:[#allocation22_spill] sm:$0xff] }
 0x209   :  { %v1803_v62 = vpop.eup %1802 }
 0x20a   :  { %v541_v56 = vmul.f32 0.5, %v540_v59  ;;  %v547_v63 = vadd.f32 1.0, %v1803_v62  ;;  %v1805_v57 = vpop.eup %1804  ;;  %v3042_v59 = vld [vmem:[#allocation23_spill] sm:$0xff]  ;;  %v3043_v62 = vld [vmem:[#allocation24_spill] sm:$0xff] }
 0x20b   :  { %v1807_v52 = vpop.eup %1806 }
 0x20c   :  { %v548_v60 = vmul.f32 0.5, %v547_v63  ;;  %v559_v54 = vmul.f32 %v1805_v57, %v541_v56  ;;  %v556_v49 = vadd.f32 1.0, %v1807_v52  ;;  %v3044_v56 = vld [vmem:[#allocation25_spill] sm:$0xff]  ;;  %v3045_v63 = vld [vmem:[#allocation26_spill] sm:$0xff]  ;;  %v3047_v57 = vld [vmem:[#allocation28_spill] sm:$0xff] }
 0x20d   :  { %v3050_v52 = vld [vmem:[#allocation31_spill] sm:$0xff] }
 0x20e   :  { %v558_v55 = vmul.f32 %v548_v60, %v2304_v1  ;;  %v557_v2 = vmul.f32 0.5, %v556_v49  ;;  %v3037_v1 = vld [vmem:[#allocation18_spill] sm:$0xff]  ;;  %v3046_v60 = vld [vmem:[#allocation27_spill] sm:$0xff]  ;;  %v3051_v49 = vld [vmem:[#allocation32_spill] sm:$0xff] }
 0x210   :  { %v2377_v61 = vadd.f32 %v559_v54, %v558_v55  ;;  %v3048_v55 = vld [vmem:[#allocation29_spill] sm:$0xff]  ;;  %v3049_v54 = vld [vmem:[#allocation30_spill] sm:$0xff] }
 0x212   :  { %1808 = vtanh.f32 %v2377_v61 }
 0x21f   :  { %v1809_v53 = vpop.eup %1808 }
 0x220   :  { %v562_v51 = vmul.f32 %v1809_v53, %v557_v2  ;;  %v3052_v2 = vld [vmem:[#allocation33_spill] sm:$0xff]  ;;  %v3053_v53 = vld [vmem:[#allocation34_spill] sm:$0xff] }
 0x222   :  { %630 = vmatmul.mubr.f32.vlgmr.msra.gmra.mxu0 %v562_v51  ;;  %701 = vmatmul.mubr.f32.vlgmr.msra.gmra.mxu1 %v562_v51  ;;  %v3054_v51 = vmov 0.0  }
 0x223   :  { %765 = vmatpush1.msra.mxu0 %v2032_v5  ;;  %836 = vmatpush1.msra.mxu1 %v2036_v6 }
 0x224   :  { %766 = vmatprep.subr.mxu0 %v2038_v7  ;;  %837 = vmatprep.subr.mxu1 %v2040_v8 }
 0x225   :  { %767 = vmatpush1.msra.mxu0 %v2044_v9  ;;  %838 = vmatpush1.msra.mxu1 %v2046_v10 }
 0x226   :  { %768 = vmatprep.subr.mxu0 %v2048_v11  ;;  %839 = vmatprep.subr.mxu1 %v2052_v12 }
 0x227   :  { %769 = vmatpush1.msra.mxu0 %v2054_v13  ;;  %840 = vmatpush1.msra.mxu1 %v2056_v14 }
 0x228   :  { %770 = vmatprep.subr.mxu0 %v2060_v15  ;;  %841 = vmatprep.subr.mxu1 %v2062_v16 }
 0x229   :  { %771 = vmatpush1.msra.mxu0 %v2066_v17  ;;  %842 = vmatpush1.msra.mxu1 %v2068_v18 }
 0x22a   :  { %772 = vmatprep.subr.mxu0 %v2072_v19  ;;  %843 = vmatprep.subr.mxu1 %v2074_v20 }
 0x22b   :  { %773 = vmatpush1.msra.mxu0 %v2078_v21  ;;  %844 = vmatpush1.msra.mxu1 %v2080_v22 }
 0x22c   :  { %774 = vmatprep.subr.mxu0 %v2084_v23  ;;  %845 = vmatprep.subr.mxu1 %v2086_v24 }
 0x22d   :  { %775 = vmatpush1.msra.mxu0 %v2090_v25  ;;  %846 = vmatpush1.msra.mxu1 %v2092_v26 }
 0x22e   :  { %776 = vmatprep.subr.mxu0 %v2096_v27  ;;  %847 = vmatprep.subr.mxu1 %v2098_v28 }
 0x22f   :  { %777 = vmatpush1.msra.mxu0 %v2102_v29  ;;  %848 = vmatpush1.msra.mxu1 %v2104_v30 }
 0x230   :  { %778 = vmatprep.subr.mxu0 %v2108_v31  ;;  %849 = vmatprep.subr.mxu1 %v2110_v32 }
 0x231   :  { %779 = vmatpush1.msra.mxu0 %v2114_v33  ;;  %850 = vmatpush1.msra.mxu1 %v2116_v34 }
 0x232   :  { %780 = vmatprep.subr.mxu0 %v2120_v35  ;;  %851 = vmatprep.subr.mxu1 %v2122_v36 }
 0x233   :  { %781 = vmatpush1.msra.mxu0 %v2126_v37  ;;  %852 = vmatpush1.msra.mxu1 %v2128_v38 }
 0x234   :  { %782 = vmatprep.subr.mxu0 %v2132_v39  ;;  %853 = vmatprep.subr.mxu1 %v2134_v40 }
 0x235   :  { %783 = vmatpush1.msra.mxu0 %v2138_v41  ;;  %854 = vmatpush1.msra.mxu1 %v2140_v42 }
 0x236   :  { %784 = vmatprep.subr.mxu0 %v3010_v50  ;;  %855 = vmatprep.subr.mxu1 %v3011_v48 }
 0x237   :  { %785 = vmatpush1.msra.mxu0 %v3012_v46  ;;  %856 = vmatpush1.msra.mxu1 %v3013_v45 }
 0x238   :  { %786 = vmatprep.subr.mxu0 %v3014_v47  ;;  %857 = vmatprep.subr.mxu1 %v3015_v44 }
 0x239   :  { %787 = vmatpush1.msra.mxu0 %v3037_v1  ;;  %858 = vmatpush1.msra.mxu1 %v3038_v43 }
 0x23a   :  { %788 = vmatprep.subr.mxu0 %v3039_v3  ;;  %859 = vmatprep.subr.mxu1 %v3040_v4 }
 0x23b   :  { %789 = vmatpush1.msra.mxu0 %v3041_v0  ;;  %860 = vmatpush1.msra.mxu1 %v3042_v59 }
 0x23c   :  { %790 = vmatprep.subr.mxu0 %v3043_v62  ;;  %861 = vmatprep.subr.mxu1 %v3044_v56  ;;  %v3055_v56 = vld [vmem:[#allocation35_spill] sm:$0xff] }
 0x23d   :  { %791 = vmatpush1.msra.mxu0 %v3045_v63  ;;  %862 = vmatpush1.msra.mxu1 %v3046_v60  ;;  %v3056_v60 = vld [vmem:[#allocation10_spill] sm:$0xff] }
 0x23e   :  { %792 = vmatprep.subr.mxu0 %v3047_v57  ;;  %863 = vmatprep.subr.mxu1 %v3048_v55  ;;  %v3057_v57 = vld [vmem:[#allocation11_spill] sm:$0xff] }
 0x23f   :  { %793 = vmatpush1.msra.mxu0 %v3049_v54  ;;  %864 = vmatpush1.msra.mxu1 %v3050_v52 }
 0x240   :  { %794 = vmatprep.subr.mxu0 %v3051_v49  ;;  %865 = vmatprep.subr.mxu1 %v3052_v2 }
 0x241   :  { %795 = vmatpush1.msra.mxu0 %v3053_v53  ;;  %828 = vmatprep.mubr.f32.mxu0 %v3054_v51 }
 0x242   :  { %866 = vmatpush1.msra.mxu1 %v3055_v56  ;;  %899 = vmatprep.mubr.f32.mxu1 %v3054_v51  ;;  %v564_v56 = vld [vmem:[#allocation2 + $0x2] ss:$8 sm:$0xf] }
 0x243   :  { %963 = vmatprep.subr.mxu0 %v3056_v60  ;;  %1034 = vmatprep.subr.mxu1 %v3057_v57 }
 0x2e2   :  { %v631_v55 = vpop.f32.mrf.mxu0  ;;  %v702_v54 = vpop.f32.mrf.mxu1 }
 0x2e4   :  { %v633_v63 = vpop.f32.mrf.mxu0  ;;  %v704_v52 = vpop.f32.mrf.mxu1 }
 0x2e5   :  { %v711_v62 = vcombine.low %v631_v55, %v633_v63  ;;  %v712_v49 = vcombine.low %v702_v54, %v704_v52 }
 0x2e7   :  { %v719_v2 = vrot.slane %v711_v62, %v2299_v58  ;;  %v726_v53 = vrot.slane %v712_v49, %v2299_v58 }
 0x2e9   :  { %v727_v59 = vcombine.low %v719_v2, %v726_v53 }
 0x2eb   :  { %v734_v0 = vrot.slane %v727_v59, %v2299_v58 }
 0x2ed   :  { %v736_v4 = vadd.f32 %v734_v0, %v564_v56 }
 0x2ef   :  { %v737_v51 = vmul.f32 0.5, %v736_v4  ;;  %v742_v3 = vrot.slane %v736_v4, 1  ;;  %v748_v57 = vrot.slane %v736_v4, 2  ;;  %v751_v43 = vrot.slane %v736_v4, 3 }
 0x2f1   :  { %1810 = vtanh.f32 %v737_v51  ;;  %v744_v60 = vmul.f32 0.5, %v742_v3  ;;  %v753_v1 = vmul.f32 0.5, %v751_v43 }
 0x2f3   :  { %1812 = vtanh.f32 %v744_v60 }
 0x2f4   :  { %1814 = vtanh.f32 %v748_v57 }
 0x2f5   :  { %1816 = vtanh.f32 %v753_v1 }
 0x2fe   :  { %v1811_v63 = vpop.eup %1810 }
 0x2ff   :  { %v739_v55 = vadd.f32 1.0, %v1811_v63 }
 0x300   :  { %v1813_v54 = vpop.eup %1812 }
 0x301   :  { %v740_v62 = vmul.f32 0.5, %v739_v55  ;;  %v746_v52 = vadd.f32 1.0, %v1813_v54  ;;  %v1815_v2 = vpop.eup %1814 }
 0x302   :  { %v1817_v3 = vpop.eup %1816 }
 0x303   :  { %v747_v49 = vmul.f32 0.5, %v746_v52  ;;  %v758_v0 = vmul.f32 %v1815_v2, %v740_v62  ;;  %v755_v53 = vadd.f32 1.0, %v1817_v3  ;;  %v2530_v2 = vld [vmem:[#allocation4 + $0x1e0] sm:$0xff] }
 0x304   :  { %v2542_v3 = vld [vmem:[#allocation4 + $0x1c0] sm:$0xff] }
 0x305   :  { %v757_v59 = vmul.f32 %v747_v49, %v2377_v61  ;;  %v756_v51 = vmul.f32 0.5, %v755_v53  ;;  %v2545_v53 = vld [vmem:[#allocation4 + $0x1d0] sm:$0xff] }
 0x307   :  { %v2450_v56 = vadd.f32 %v758_v0, %v757_v59  ;;  %v2533_v59 = vld [vmem:[#allocation4 + $0x1f0] sm:$0xff]  ;;  %v2536_v0 = vld [vmem:[#allocation4 + $0x1c8] sm:$0xff] }
 0x309   :  { %1818 = vtanh.f32 %v2450_v56 }
 0x316   :  { %v1819_v4 = vpop.eup %1818 }
 0x317   :  { %v761_v43 = vmul.f32 %v1819_v4, %v756_v51  ;;  %v2548_v51 = vld [vmem:[#allocation4 + $0x1a8] sm:$0xff]  ;;  %v2551_v4 = vld [vmem:[#allocation4 + $0x1b8] sm:$0xff] }
 0x319   :  { %829 = vmatmul.mubr.f32.vlgmr.msra.gmra.mxu0 %v761_v43  ;;  %900 = vmatmul.mubr.f32.vlgmr.msra.gmra.mxu1 %v761_v43  ;;  %v2554_v43 = vld [vmem:[#allocation4 + $0x1a0] sm:$0xff] }
 0x31a   :  { %964 = vmatpush1.msra.mxu0 %v2032_v5  ;;  %1035 = vmatpush1.msra.mxu1 %v2036_v6  ;;  %v3058_v5 = vld [vmem:[#allocation18_spill] sm:$0xff]  ;;  %v3059_v6 = vld [vmem:[#allocation19_spill] sm:$0xff] }
 0x31b   :  { %965 = vmatprep.subr.mxu0 %v2038_v7  ;;  %1036 = vmatprep.subr.mxu1 %v2040_v8  ;;  %v3060_v7 = vld [vmem:[#allocation20_spill] sm:$0xff]  ;;  %v3061_v8 = vld [vmem:[#allocation21_spill] sm:$0xff] }
 0x31c   :  { %966 = vmatpush1.msra.mxu0 %v2044_v9  ;;  %1037 = vmatpush1.msra.mxu1 %v2046_v10  ;;  %v3062_v9 = vld [vmem:[#allocation22_spill] sm:$0xff]  ;;  %v3063_v10 = vld [vmem:[#allocation23_spill] sm:$0xff] }
 0x31d   :  { %967 = vmatprep.subr.mxu0 %v2048_v11  ;;  %1038 = vmatprep.subr.mxu1 %v2052_v12  ;;  %v3064_v11 = vld [vmem:[#allocation24_spill] sm:$0xff]  ;;  %v3065_v12 = vld [vmem:[#allocation25_spill] sm:$0xff] }
 0x31e   :  { %968 = vmatpush1.msra.mxu0 %v2054_v13  ;;  %1039 = vmatpush1.msra.mxu1 %v2056_v14  ;;  %v3066_v13 = vld [vmem:[#allocation26_spill] sm:$0xff]  ;;  %v3067_v14 = vld [vmem:[#allocation27_spill] sm:$0xff] }
 0x31f   :  { %969 = vmatprep.subr.mxu0 %v2060_v15  ;;  %1040 = vmatprep.subr.mxu1 %v2062_v16  ;;  %v3068_v15 = vld [vmem:[#allocation28_spill] sm:$0xff]  ;;  %v3069_v16 = vld [vmem:[#allocation29_spill] sm:$0xff] }
 0x320   :  { %970 = vmatpush1.msra.mxu0 %v2066_v17  ;;  %1041 = vmatpush1.msra.mxu1 %v2068_v18  ;;  %v3070_v17 = vld [vmem:[#allocation30_spill] sm:$0xff]  ;;  %v3071_v18 = vld [vmem:[#allocation31_spill] sm:$0xff] }
 0x321   :  { %971 = vmatprep.subr.mxu0 %v2072_v19  ;;  %1042 = vmatprep.subr.mxu1 %v2074_v20  ;;  %v3072_v19 = vld [vmem:[#allocation32_spill] sm:$0xff]  ;;  %v3073_v20 = vld [vmem:[#allocation33_spill] sm:$0xff] }
 0x322   :  { %972 = vmatpush1.msra.mxu0 %v2078_v21  ;;  %1043 = vmatpush1.msra.mxu1 %v2080_v22  ;;  %v3074_v21 = vld [vmem:[#allocation34_spill] sm:$0xff]  ;;  %v3075_v22 = vmov 0.0  }
 0x323   :  { %973 = vmatprep.subr.mxu0 %v2084_v23  ;;  %1044 = vmatprep.subr.mxu1 %v2086_v24  ;;  %v3076_v23 = vld [vmem:[#allocation35_spill] sm:$0xff] }
 0x324   :  { %974 = vmatpush1.msra.mxu0 %v2090_v25  ;;  %1045 = vmatpush1.msra.mxu1 %v2092_v26  ;;  %v2517_v24 = vld [vmem:[#allocation4 + $0x1e8] sm:$0xff]  ;;  %v2520_v25 = vld [vmem:[#allocation4 + $0x1f8] sm:$0xff] }
 0x325   :  { %975 = vmatprep.subr.mxu0 %v2096_v27  ;;  %1046 = vmatprep.subr.mxu1 %v2098_v28  ;;  %3077 = vst [vmem:[#allocation12_spill] sm:$0xff] %v2517_v24  ;;  %3078 = vst [vmem:[#allocation13_spill] sm:$0xff] %v2520_v25 }
 0x326   :  { %976 = vmatpush1.msra.mxu0 %v2102_v29  ;;  %1047 = vmatpush1.msra.mxu1 %v2104_v30 }
 0x327   :  { %977 = vmatprep.subr.mxu0 %v2108_v31  ;;  %1048 = vmatprep.subr.mxu1 %v2110_v32 }
 0x328   :  { %978 = vmatpush1.msra.mxu0 %v2114_v33  ;;  %1049 = vmatpush1.msra.mxu1 %v2116_v34 }
 0x329   :  { %979 = vmatprep.subr.mxu0 %v2120_v35  ;;  %1050 = vmatprep.subr.mxu1 %v2122_v36  ;;  %v763_v36 = vld [vmem:[#allocation2 + $0x3] ss:$8 sm:$0xf] }
 0x32a   :  { %980 = vmatpush1.msra.mxu0 %v2126_v37  ;;  %1051 = vmatpush1.msra.mxu1 %v2128_v38 }
 0x32b   :  { %981 = vmatprep.subr.mxu0 %v2132_v39  ;;  %1052 = vmatprep.subr.mxu1 %v2134_v40 }
 0x32c   :  { %982 = vmatpush1.msra.mxu0 %v2138_v41  ;;  %1053 = vmatpush1.msra.mxu1 %v2140_v42 }
 0x32d   :  { %983 = vmatprep.subr.mxu0 %v3010_v50  ;;  %1054 = vmatprep.subr.mxu1 %v3011_v48 }
 0x32e   :  { %984 = vmatpush1.msra.mxu0 %v3012_v46  ;;  %1055 = vmatpush1.msra.mxu1 %v3013_v45 }
 0x32f   :  { %985 = vmatprep.subr.mxu0 %v3014_v47  ;;  %1056 = vmatprep.subr.mxu1 %v3015_v44 }
 0x330   :  { %986 = vmatpush1.msra.mxu0 %v3058_v5  ;;  %1057 = vmatpush1.msra.mxu1 %v3059_v6  ;;  %v2557_v5 = vld [vmem:[#allocation4 + $0x1b0] sm:$0xff]  ;;  %v2560_v6 = vld [vmem:[#allocation4 + $0x188] sm:$0xff] }
 0x331   :  { %987 = vmatprep.subr.mxu0 %v3060_v7  ;;  %1058 = vmatprep.subr.mxu1 %v3061_v8  ;;  %v2563_v7 = vld [vmem:[#allocation4 + $0x198] sm:$0xff]  ;;  %v2566_v8 = vld [vmem:[#allocation4 + $0x180] sm:$0xff] }
 0x332   :  { %988 = vmatpush1.msra.mxu0 %v3062_v9  ;;  %1059 = vmatpush1.msra.mxu1 %v3063_v10  ;;  %v2569_v9 = vld [vmem:[#allocation4 + $0x190] sm:$0xff]  ;;  %v2572_v10 = vld [vmem:[#allocation4 + $0x168] sm:$0xff] }
 0x333   :  { %989 = vmatprep.subr.mxu0 %v3064_v11  ;;  %1060 = vmatprep.subr.mxu1 %v3065_v12  ;;  %v2575_v11 = vld [vmem:[#allocation4 + $0x178] sm:$0xff]  ;;  %v2578_v12 = vld [vmem:[#allocation4 + $0x160] sm:$0xff] }
 0x334   :  { %990 = vmatpush1.msra.mxu0 %v3066_v13  ;;  %1061 = vmatpush1.msra.mxu1 %v3067_v14  ;;  %v2581_v13 = vld [vmem:[#allocation4 + $0x170] sm:$0xff]  ;;  %v2584_v14 = vld [vmem:[#allocation4 + $0x148] sm:$0xff] }
 0x335   :  { %991 = vmatprep.subr.mxu0 %v3068_v15  ;;  %1062 = vmatprep.subr.mxu1 %v3069_v16  ;;  %v2587_v15 = vld [vmem:[#allocation4 + $0x158] sm:$0xff]  ;;  %v2590_v16 = vld [vmem:[#allocation4 + $0x140] sm:$0xff] }
 0x336   :  { %992 = vmatpush1.msra.mxu0 %v3070_v17  ;;  %1063 = vmatpush1.msra.mxu1 %v3071_v18  ;;  %v2593_v17 = vld [vmem:[#allocation4 + $0x150] sm:$0xff]  ;;  %v2596_v18 = vld [vmem:[#allocation4 + $0x128] sm:$0xff] }
 0x337   :  { %993 = vmatprep.subr.mxu0 %v3072_v19  ;;  %1064 = vmatprep.subr.mxu1 %v3073_v20  ;;  %v2599_v19 = vld [vmem:[#allocation4 + $0x138] sm:$0xff]  ;;  %v2602_v20 = vld [vmem:[#allocation4 + $0x120] sm:$0xff] }
 0x338   :  { %994 = vmatpush1.msra.mxu0 %v3074_v21  ;;  %1027 = vmatprep.mubr.f32.mxu0 %v3075_v22  ;;  %v2605_v21 = vld [vmem:[#allocation4 + $0x130] sm:$0xff] }
 0x339   :  { %1065 = vmatpush1.msra.mxu1 %v3076_v23  ;;  %1098 = vmatprep.mubr.f32.mxu1 %v3075_v22  ;;  %v2608_v23 = vld [vmem:[#allocation4 + $0x108] sm:$0xff] }
 0x33a   :  { %1162 = vmatprep.subr.mxu0 %v2517_v24  ;;  %1233 = vmatprep.subr.mxu1 %v2520_v25 }
 0x3d9   :  { %v830_v26 = vpop.f32.mrf.mxu0  ;;  %v901_v27 = vpop.f32.mrf.mxu1 }
 0x3db   :  { %v832_v28 = vpop.f32.mrf.mxu0  ;;  %v903_v29 = vpop.f32.mrf.mxu1 }
 0x3dc   :  { %v910_v30 = vcombine.low %v830_v26, %v832_v28  ;;  %v911_v31 = vcombine.low %v901_v27, %v903_v29  ;;  %v2611_v26 = vld [vmem:[#allocation4 + $0x118] sm:$0xff]  ;;  %v2614_v27 = vld [vmem:[#allocation4 + $0x100] sm:$0xff]  ;;  %v2617_v28 = vld [vmem:[#allocation4 + $0x110] sm:$0xff] }
 0x3dd   :  { %v2620_v29 = vld [vmem:[#allocation4 + $0xe8] sm:$0xff] }
 0x3de   :  { %v918_v32 = vrot.slane %v910_v30, %v2299_v58  ;;  %v925_v33 = vrot.slane %v911_v31, %v2299_v58  ;;  %v2623_v30 = vld [vmem:[#allocation4 + $0xf8] sm:$0xff]  ;;  %v2626_v31 = vld [vmem:[#allocation4 + $0xe0] sm:$0xff] }
 0x3e0   :  { %v926_v34 = vcombine.low %v918_v32, %v925_v33  ;;  %v2629_v32 = vld [vmem:[#allocation4 + $0xf0] sm:$0xff]  ;;  %v2632_v33 = vld [vmem:[#allocation4 + $0xc8] sm:$0xff] }
 0x3e2   :  { %v933_v35 = vrot.slane %v926_v34, %v2299_v58  ;;  %v2635_v34 = vld [vmem:[#allocation4 + $0xd8] sm:$0xff] }
 0x3e4   :  { %v935_v37 = vadd.f32 %v933_v35, %v763_v36  ;;  %v2638_v35 = vld [vmem:[#allocation4 + $0xc0] sm:$0xff]  ;;  %v2641_v36 = vld [vmem:[#allocation4 + $0xd0] sm:$0xff] }
 0x3e6   :  { %v936_v38 = vmul.f32 0.5, %v935_v37  ;;  %v941_v39 = vrot.slane %v935_v37, 1  ;;  %v947_v41 = vrot.slane %v935_v37, 2  ;;  %v950_v42 = vrot.slane %v935_v37, 3  ;;  %v2644_v37 = vld [vmem:[#allocation4 + $0xa8] sm:$0xff] }
 0x3e8   :  { %1820 = vtanh.f32 %v936_v38  ;;  %v943_v40 = vmul.f32 0.5, %v941_v39  ;;  %v952_v50 = vmul.f32 0.5, %v950_v42  ;;  %v2647_v38 = vld [vmem:[#allocation4 + $0xb8] sm:$0xff]  ;;  %v2650_v39 = vld [vmem:[#allocation4 + $0xa0] sm:$0xff] }
 0x3e9   :  { %v2659_v42 = vld [vmem:[#allocation4 + $0x98] sm:$0xff] }
 0x3ea   :  { %1822 = vtanh.f32 %v943_v40  ;;  %v2653_v40 = vld [vmem:[#allocation4 + $0xb0] sm:$0xff] }
 0x3eb   :  { %1824 = vtanh.f32 %v947_v41  ;;  %v2656_v41 = vld [vmem:[#allocation4 + $0x88] sm:$0xff] }
 0x3ec   :  { %1826 = vtanh.f32 %v952_v50  ;;  %v2662_v50 = vld [vmem:[#allocation4 + $0x80] sm:$0xff] }
 0x3ed   :  { %3079 = vst [vmem:[#allocation14_spill] sm:$0xff] %v2662_v50 }
 0x3f5   :  { %v1821_v48 = vpop.eup %1820 }
 0x3f6   :  { %v938_v46 = vadd.f32 1.0, %v1821_v48  ;;  %v2665_v48 = vld [vmem:[#allocation4 + $0x90] sm:$0xff] }
 0x3f7   :  { %v1823_v45 = vpop.eup %1822  ;;  %3080 = vst [vmem:[#allocation15_spill] sm:$0xff] %v2665_v48 }
 0x3f8   :  { %v939_v47 = vmul.f32 0.5, %v938_v46  ;;  %v945_v44 = vadd.f32 1.0, %v1823_v45  ;;  %v1825_v1 = vpop.eup %1824  ;;  %v2668_v46 = vld [vmem:[#allocation4 + $0x68] sm:$0xff]  ;;  %v2671_v45 = vld [vmem:[#allocation4 + $0x78] sm:$0xff] }
 0x3f9   :  { %v1827_v55 = vpop.eup %1826  ;;  %3081 = vst [vmem:[#allocation16_spill] sm:$0xff] %v2668_v46  ;;  %3082 = vst [vmem:[#allocation17_spill] sm:$0xff] %v2671_v45 }
 0x3fa   :  { %v946_v61 = vmul.f32 0.5, %v945_v44  ;;  %v957_v57 = vmul.f32 %v1825_v1, %v939_v47  ;;  %v954_v54 = vadd.f32 1.0, %v1827_v55  ;;  %v2674_v47 = vld [vmem:[#allocation4 + $0x60] sm:$0xff]  ;;  %v2677_v44 = vld [vmem:[#allocation4 + $0x70] sm:$0xff]  ;;  %v2683_v1 = vld [vmem:[#allocation4 + $0x58] sm:$0xff] }
 0x3fb   :  { %3083 = vst [vmem:[#allocation10_spill] sm:$0xff] %v2674_v47  ;;  %3084 = vst [vmem:[#allocation11_spill] sm:$0xff] %v2677_v44  ;;  %v2692_v55 = vld [vmem:[#allocation4 + $0x28] sm:$0xff] }
 0x3fc   :  { %v956_v60 = vmul.f32 %v946_v61, %v2450_v56  ;;  %v955_v62 = vmul.f32 0.5, %v954_v54  ;;  %v2539_v56 = vld [vmem:[#allocation4 + $0x1d8] sm:$0xff]  ;;  %v2680_v61 = vld [vmem:[#allocation4 + $0x48] sm:$0xff]  ;;  %3086 = vst [vmem:[#allocation19_spill] sm:$0xff] %v2683_v1  ;;  %3089 = vst [vmem:[#allocation22_spill] sm:$0xff] %v2692_v55 }
 0x3fd   :  { %3085 = vst [vmem:[#allocation18_spill] sm:$0xff] %v2680_v61  ;;  %v2695_v54 = vld [vmem:[#allocation4 + $0x38] sm:$0xff] }
 0x3fe   :  { %v2527_v63 = vadd.f32 %v957_v57, %v956_v60  ;;  %v2686_v60 = vld [vmem:[#allocation4 + $0x40] sm:$0xff]  ;;  %v2689_v57 = vld [vmem:[#allocation4 + $0x50] sm:$0xff]  ;;  %3090 = vst [vmem:[#allocation23_spill] sm:$0xff] %v2695_v54 }
 0x3ff   :  { %3087 = vst [vmem:[#allocation20_spill] sm:$0xff] %v2686_v60  ;;  %3088 = vst [vmem:[#allocation21_spill] sm:$0xff] %v2689_v57 }
 0x400   :  { %1828 = vtanh.f32 %v2527_v63 }
 0x40d   :  { %v1829_v52 = vpop.eup %1828 }
 0x40e   :  { %v960_v49 = vmul.f32 %v1829_v52, %v955_v62  ;;  %v2698_v62 = vld [vmem:[#allocation4 + $0x20] sm:$0xff]  ;;  %v2701_v52 = vld [vmem:[#allocation4 + $0x30] sm:$0xff] }
 0x40f   :  { %3091 = vst [vmem:[#allocation24_spill] sm:$0xff] %v2698_v62  ;;  %3092 = vst [vmem:[#allocation25_spill] sm:$0xff] %v2701_v52 }
 0x410   :  { %1028 = vmatmul.mubr.f32.vlgmr.msra.gmra.mxu0 %v960_v49  ;;  %1099 = vmatmul.mubr.f32.vlgmr.msra.gmra.mxu1 %v960_v49  ;;  %v2704_v49 = vld [vmem:[#allocation4 + $0x8] sm:$0xff] }
 0x411   :  { %1163 = vmatpush1.msra.mxu0 %v2530_v2  ;;  %1234 = vmatpush1.msra.mxu1 %v2533_v59  ;;  %3093 = vst [vmem:[#allocation26_spill] sm:$0xff] %v2704_v49 }
 0x412   :  { %1164 = vmatprep.subr.mxu0 %v2536_v0  ;;  %1235 = vmatprep.subr.mxu1 %v2539_v56 }
 0x413   :  { %1165 = vmatpush1.msra.mxu0 %v2542_v3  ;;  %1236 = vmatpush1.msra.mxu1 %v2545_v53 }
 0x414   :  { %1166 = vmatprep.subr.mxu0 %v2548_v51  ;;  %1237 = vmatprep.subr.mxu1 %v2551_v4 }
 0x415   :  { %1167 = vmatpush1.msra.mxu0 %v2554_v43  ;;  %1238 = vmatpush1.msra.mxu1 %v2557_v5 }
 0x416   :  { %1168 = vmatprep.subr.mxu0 %v2560_v6  ;;  %1239 = vmatprep.subr.mxu1 %v2563_v7 }
 0x417   :  { %1169 = vmatpush1.msra.mxu0 %v2566_v8  ;;  %1240 = vmatpush1.msra.mxu1 %v2569_v9 }
 0x418   :  { %1170 = vmatprep.subr.mxu0 %v2572_v10  ;;  %1241 = vmatprep.subr.mxu1 %v2575_v11 }
 0x419   :  { %1171 = vmatpush1.msra.mxu0 %v2578_v12  ;;  %1242 = vmatpush1.msra.mxu1 %v2581_v13 }
 0x41a   :  { %1172 = vmatprep.subr.mxu0 %v2584_v14  ;;  %1243 = vmatprep.subr.mxu1 %v2587_v15 }
 0x41b   :  { %1173 = vmatpush1.msra.mxu0 %v2590_v16  ;;  %1244 = vmatpush1.msra.mxu1 %v2593_v17 }
 0x41c   :  { %1174 = vmatprep.subr.mxu0 %v2596_v18  ;;  %1245 = vmatprep.subr.mxu1 %v2599_v19 }
 0x41d   :  { %1175 = vmatpush1.msra.mxu0 %v2602_v20  ;;  %1246 = vmatpush1.msra.mxu1 %v2605_v21 }
 0x41e   :  { %1176 = vmatprep.subr.mxu0 %v2608_v23  ;;  %1247 = vmatprep.subr.mxu1 %v2611_v26 }
 0x41f   :  { %1177 = vmatpush1.msra.mxu0 %v2614_v27  ;;  %1248 = vmatpush1.msra.mxu1 %v2617_v28 }
 0x420   :  { %1178 = vmatprep.subr.mxu0 %v2620_v29  ;;  %1249 = vmatprep.subr.mxu1 %v2623_v30 }
 0x421   :  { %1179 = vmatpush1.msra.mxu0 %v2626_v31  ;;  %1250 = vmatpush1.msra.mxu1 %v2629_v32 }
 0x422   :  { %1180 = vmatprep.subr.mxu0 %v2632_v33  ;;  %1251 = vmatprep.subr.mxu1 %v2635_v34 }
 0x423   :  { %1181 = vmatpush1.msra.mxu0 %v2638_v35  ;;  %1252 = vmatpush1.msra.mxu1 %v2641_v36 }
 0x424   :  { %1182 = vmatprep.subr.mxu0 %v2644_v37  ;;  %1253 = vmatprep.subr.mxu1 %v2647_v38 }
 0x425   :  { %1183 = vmatpush1.msra.mxu0 %v2650_v39  ;;  %1254 = vmatpush1.msra.mxu1 %v2653_v40 }
 0x426   :  { %1184 = vmatprep.subr.mxu0 %v2656_v41  ;;  %1255 = vmatprep.subr.mxu1 %v2659_v42 }
 0x427   :  { %1185 = vmatpush1.msra.mxu0 %v2662_v50  ;;  %1256 = vmatpush1.msra.mxu1 %v2665_v48 }
 0x428   :  { %1186 = vmatprep.subr.mxu0 %v2668_v46  ;;  %1257 = vmatprep.subr.mxu1 %v2671_v45 }
 0x429   :  { %1187 = vmatpush1.msra.mxu0 %v2674_v47  ;;  %1258 = vmatpush1.msra.mxu1 %v2677_v44 }
 0x42a   :  { %1188 = vmatprep.subr.mxu0 %v2680_v61  ;;  %1259 = vmatprep.subr.mxu1 %v2683_v1 }
 0x42b   :  { %1189 = vmatpush1.msra.mxu0 %v2686_v60  ;;  %1260 = vmatpush1.msra.mxu1 %v2689_v57  ;;  %v2707_v57 = vld [vmem:[#allocation4 + $0x18] sm:$0xff] }
 0x42c   :  { %1190 = vmatprep.subr.mxu0 %v2692_v55  ;;  %1261 = vmatprep.subr.mxu1 %v2695_v54  ;;  %3094 = vst [vmem:[#allocation27_spill] sm:$0xff] %v2707_v57  ;;  %v2710_v55 = vld [vmem:[#allocation4] sm:$0xff]  ;;  %v2714_v54 = vld [vmem:[#allocation4 + $0x10] sm:$0xff] }
 0x42d   :  { %1191 = vmatpush1.msra.mxu0 %v2698_v62  ;;  %1262 = vmatpush1.msra.mxu1 %v2701_v52  ;;  %3095 = vst [vmem:[#allocation28_spill] sm:$0xff] %v2710_v55  ;;  %3096 = vst [vmem:[#allocation29_spill] sm:$0xff] %v2714_v54 }
 0x42e   :  { %1192 = vmatprep.subr.mxu0 %v2704_v49  ;;  %1263 = vmatprep.subr.mxu1 %v2707_v57 }
 0x42f   :  { %1193 = vmatpush1.msra.mxu0 %v2710_v55  ;;  %1226 = vmatprep.mubr.f32.mxu0 %v3075_v22 }
 0x430   :  { %1264 = vmatpush1.msra.mxu1 %v2714_v54  ;;  %1297 = vmatprep.mubr.f32.mxu1 %v3075_v22  ;;  %v962_v54 = vld [vmem:[#allocation2 + $0x4] ss:$8 sm:$0xf] }
 0x431   :  { %1361 = vmatprep.subr.mxu0 %v2517_v24  ;;  %1432 = vmatprep.subr.mxu1 %v2520_v25 }
 0x4d0   :  { %v1029_v49 = vpop.f32.mrf.mxu0  ;;  %v1100_v52 = vpop.f32.mrf.mxu1 }
 0x4d2   :  { %v1031_v62 = vpop.f32.mrf.mxu0  ;;  %v1102_v57 = vpop.f32.mrf.mxu1 }
 0x4d3   :  { %v1109_v60 = vcombine.low %v1029_v49, %v1031_v62  ;;  %v1110_v1 = vcombine.low %v1100_v52, %v1102_v57 }
 0x4d5   :  { %v1117_v55 = vrot.slane %v1109_v60, %v2299_v58  ;;  %v1124_v61 = vrot.slane %v1110_v1, %v2299_v58 }
 0x4d7   :  { %v1125_v44 = vcombine.low %v1117_v55, %v1124_v61 }
 0x4d9   :  { %v1132_v47 = vrot.slane %v1125_v44, %v2299_v58 }
 0x4db   :  { %v1134_v45 = vadd.f32 %v1132_v47, %v962_v54  ;;  %v3100_v54 = vld [vmem:[#allocation17_spill] sm:$0xff] }
 0x4dd   :  { %v1135_v22 = vmul.f32 0.5, %v1134_v45  ;;  %v1140_v46 = vrot.slane %v1134_v45, 1  ;;  %v1146_v25 = vrot.slane %v1134_v45, 2  ;;  %v1149_v48 = vrot.slane %v1134_v45, 3  ;;  %v3099_v45 = vld [vmem:[#allocation16_spill] sm:$0xff] }
 0x4df   :  { %1830 = vtanh.f32 %v1135_v22  ;;  %v1142_v24 = vmul.f32 0.5, %v1140_v46  ;;  %v1151_v50 = vmul.f32 0.5, %v1149_v48 }
 0x4e1   :  { %1832 = vtanh.f32 %v1142_v24 }
 0x4e2   :  { %1834 = vtanh.f32 %v1146_v25 }
 0x4e3   :  { %1836 = vtanh.f32 %v1151_v50  ;;  %v3098_v50 = vld [vmem:[#allocation15_spill] sm:$0xff] }
 0x4ec   :  { %v1831_v62 = vpop.eup %1830 }
 0x4ed   :  { %v1137_v57 = vadd.f32 1.0, %v1831_v62  ;;  %v3101_v62 = vld [vmem:[#allocation10_spill] sm:$0xff] }
 0x4ee   :  { %v1833_v52 = vpop.eup %1832 }
 0x4ef   :  { %v1138_v60 = vmul.f32 0.5, %v1137_v57  ;;  %v1144_v49 = vadd.f32 1.0, %v1833_v52  ;;  %v1835_v1 = vpop.eup %1834  ;;  %v3102_v57 = vld [vmem:[#allocation11_spill] sm:$0xff]  ;;  %v3103_v52 = vld [vmem:[#allocation18_spill] sm:$0xff] }
 0x4f0   :  { %v1837_v22 = vpop.eup %1836 }
 0x4f1   :  { %v1145_v61 = vmul.f32 0.5, %v1144_v49  ;;  %v1156_v47 = vmul.f32 %v1835_v1, %v1138_v60  ;;  %v1153_v24 = vadd.f32 1.0, %v1837_v22  ;;  %v3104_v60 = vld [vmem:[#allocation19_spill] sm:$0xff]  ;;  %v3105_v49 = vld [vmem:[#allocation20_spill] sm:$0xff]  ;;  %v3107_v1 = vld [vmem:[#allocation22_spill] sm:$0xff] }
 0x4f2   :  { %v3110_v22 = vld [vmem:[#allocation25_spill] sm:$0xff] }
 0x4f3   :  { %v1155_v44 = vmul.f32 %v1145_v61, %v2527_v63  ;;  %v1154_v25 = vmul.f32 0.5, %v1153_v24  ;;  %v3097_v63 = vld [vmem:[#allocation14_spill] sm:$0xff]  ;;  %v3106_v61 = vld [vmem:[#allocation21_spill] sm:$0xff] }
 0x4f4   :  { %v3111_v24 = vld [vmem:[#allocation26_spill] sm:$0xff] }
 0x4f5   :  { %v2724_v55 = vadd.f32 %v1156_v47, %v1155_v44  ;;  %v3108_v44 = vld [vmem:[#allocation23_spill] sm:$0xff]  ;;  %v3109_v47 = vld [vmem:[#allocation24_spill] sm:$0xff] }
 0x4f7   :  { %1838 = vtanh.f32 %v2724_v55 }
 0x504   :  { %v1839_v46 = vpop.eup %1838 }
 0x505   :  { %v1159_v48 = vmul.f32 %v1839_v46, %v1154_v25  ;;  %v3112_v25 = vld [vmem:[#allocation27_spill] sm:$0xff]  ;;  %v3113_v46 = vld [vmem:[#allocation28_spill] sm:$0xff] }
 0x507   :  { %1227 = vmatmul.mubr.f32.vlgmr.msra.gmra.mxu0 %v1159_v48  ;;  %1298 = vmatmul.mubr.f32.vlgmr.msra.gmra.mxu1 %v1159_v48  ;;  %v3114_v48 = vmov 0.0  }
 0x508   :  { %1362 = vmatpush1.msra.mxu0 %v2530_v2  ;;  %1433 = vmatpush1.msra.mxu1 %v2533_v59 }
 0x509   :  { %1363 = vmatprep.subr.mxu0 %v2536_v0  ;;  %1434 = vmatprep.subr.mxu1 %v2539_v56 }
 0x50a   :  { %1364 = vmatpush1.msra.mxu0 %v2542_v3  ;;  %1435 = vmatpush1.msra.mxu1 %v2545_v53 }
 0x50b   :  { %1365 = vmatprep.subr.mxu0 %v2548_v51  ;;  %1436 = vmatprep.subr.mxu1 %v2551_v4 }
 0x50c   :  { %1366 = vmatpush1.msra.mxu0 %v2554_v43  ;;  %1437 = vmatpush1.msra.mxu1 %v2557_v5 }
 0x50d   :  { %1367 = vmatprep.subr.mxu0 %v2560_v6  ;;  %1438 = vmatprep.subr.mxu1 %v2563_v7 }
 0x50e   :  { %1368 = vmatpush1.msra.mxu0 %v2566_v8  ;;  %1439 = vmatpush1.msra.mxu1 %v2569_v9 }
 0x50f   :  { %1369 = vmatprep.subr.mxu0 %v2572_v10  ;;  %1440 = vmatprep.subr.mxu1 %v2575_v11 }
 0x510   :  { %1370 = vmatpush1.msra.mxu0 %v2578_v12  ;;  %1441 = vmatpush1.msra.mxu1 %v2581_v13 }
 0x511   :  { %1371 = vmatprep.subr.mxu0 %v2584_v14  ;;  %1442 = vmatprep.subr.mxu1 %v2587_v15 }
 0x512   :  { %1372 = vmatpush1.msra.mxu0 %v2590_v16  ;;  %1443 = vmatpush1.msra.mxu1 %v2593_v17 }
 0x513   :  { %1373 = vmatprep.subr.mxu0 %v2596_v18  ;;  %1444 = vmatprep.subr.mxu1 %v2599_v19 }
 0x514   :  { %1374 = vmatpush1.msra.mxu0 %v2602_v20  ;;  %1445 = vmatpush1.msra.mxu1 %v2605_v21 }
 0x515   :  { %1375 = vmatprep.subr.mxu0 %v2608_v23  ;;  %1446 = vmatprep.subr.mxu1 %v2611_v26 }
 0x516   :  { %1376 = vmatpush1.msra.mxu0 %v2614_v27  ;;  %1447 = vmatpush1.msra.mxu1 %v2617_v28 }
 0x517   :  { %1377 = vmatprep.subr.mxu0 %v2620_v29  ;;  %1448 = vmatprep.subr.mxu1 %v2623_v30 }
 0x518   :  { %1378 = vmatpush1.msra.mxu0 %v2626_v31  ;;  %1449 = vmatpush1.msra.mxu1 %v2629_v32 }
 0x519   :  { %1379 = vmatprep.subr.mxu0 %v2632_v33  ;;  %1450 = vmatprep.subr.mxu1 %v2635_v34 }
 0x51a   :  { %1380 = vmatpush1.msra.mxu0 %v2638_v35  ;;  %1451 = vmatpush1.msra.mxu1 %v2641_v36 }
 0x51b   :  { %1381 = vmatprep.subr.mxu0 %v2644_v37  ;;  %1452 = vmatprep.subr.mxu1 %v2647_v38 }
 0x51c   :  { %1382 = vmatpush1.msra.mxu0 %v2650_v39  ;;  %1453 = vmatpush1.msra.mxu1 %v2653_v40 }
 0x51d   :  { %1383 = vmatprep.subr.mxu0 %v2656_v41  ;;  %1454 = vmatprep.subr.mxu1 %v2659_v42 }
 0x51e   :  { %1384 = vmatpush1.msra.mxu0 %v3097_v63  ;;  %1455 = vmatpush1.msra.mxu1 %v3098_v50 }
 0x51f   :  { %1385 = vmatprep.subr.mxu0 %v3099_v45  ;;  %1456 = vmatprep.subr.mxu1 %v3100_v54 }
 0x520   :  { %1386 = vmatpush1.msra.mxu0 %v3101_v62  ;;  %1457 = vmatpush1.msra.mxu1 %v3102_v57 }
 0x521   :  { %1387 = vmatprep.subr.mxu0 %v3103_v52  ;;  %1458 = vmatprep.subr.mxu1 %v3104_v60  ;;  %v3115_v60 = vld [vmem:[#allocation29_spill] sm:$0xff] }
 0x522   :  { %1388 = vmatpush1.msra.mxu0 %v3105_v49  ;;  %1459 = vmatpush1.msra.mxu1 %v3106_v61  ;;  %v3116_v61 = vld [vmem:[#allocation12_spill] sm:$0xff] }
 0x523   :  { %1389 = vmatprep.subr.mxu0 %v3107_v1  ;;  %1460 = vmatprep.subr.mxu1 %v3108_v44  ;;  %v3117_v1 = vld [vmem:[#allocation13_spill] sm:$0xff] }
 0x524   :  { %1390 = vmatpush1.msra.mxu0 %v3109_v47  ;;  %1461 = vmatpush1.msra.mxu1 %v3110_v22 }
 0x525   :  { %1391 = vmatprep.subr.mxu0 %v3111_v24  ;;  %1462 = vmatprep.subr.mxu1 %v3112_v25 }
 0x526   :  { %1392 = vmatpush1.msra.mxu0 %v3113_v46  ;;  %1425 = vmatprep.mubr.f32.mxu0 %v3114_v48 }
 0x527   :  { %1463 = vmatpush1.msra.mxu1 %v3115_v60  ;;  %1496 = vmatprep.mubr.f32.mxu1 %v3114_v48  ;;  %v1161_v60 = vld [vmem:[#allocation2 + $0x5] ss:$8 sm:$0xf] }
 0x528   :  { %1560 = vmatprep.subr.mxu0 %v3116_v61  ;;  %1631 = vmatprep.subr.mxu1 %v3117_v1 }
 0x5c7   :  { %v1228_v44 = vpop.f32.mrf.mxu0  ;;  %v1299_v47 = vpop.f32.mrf.mxu1 }
 0x5c9   :  { %v1230_v49 = vpop.f32.mrf.mxu0  ;;  %v1301_v22 = vpop.f32.mrf.mxu1 }
 0x5ca   :  { %v1308_v52 = vcombine.low %v1228_v44, %v1230_v49  ;;  %v1309_v24 = vcombine.low %v1299_v47, %v1301_v22 }
 0x5cc   :  { %v1316_v25 = vrot.slane %v1308_v52, %v2299_v58  ;;  %v1323_v46 = vrot.slane %v1309_v24, %v2299_v58 }
 0x5ce   :  { %v1324_v57 = vcombine.low %v1316_v25, %v1323_v46 }
 0x5d0   :  { %v1331_v62 = vrot.slane %v1324_v57, %v2299_v58 }
 0x5d2   :  { %v1333_v54 = vadd.f32 %v1331_v62, %v1161_v60 }
 0x5d4   :  { %v1334_v48 = vmul.f32 0.5, %v1333_v54  ;;  %v1339_v45 = vrot.slane %v1333_v54, 1  ;;  %v1345_v1 = vrot.slane %v1333_v54, 2  ;;  %v1348_v50 = vrot.slane %v1333_v54, 3 }
 0x5d6   :  { %1840 = vtanh.f32 %v1334_v48  ;;  %v1341_v61 = vmul.f32 0.5, %v1339_v45  ;;  %v1350_v63 = vmul.f32 0.5, %v1348_v50 }
 0x5d8   :  { %1842 = vtanh.f32 %v1341_v61 }
 0x5d9   :  { %1844 = vtanh.f32 %v1345_v1 }
 0x5da   :  { %1846 = vtanh.f32 %v1350_v63 }
 0x5e3   :  { %v1841_v49 = vpop.eup %1840 }
 0x5e4   :  { %v1336_v44 = vadd.f32 1.0, %v1841_v49 }
 0x5e5   :  { %v1843_v47 = vpop.eup %1842 }
 0x5e6   :  { %v1337_v52 = vmul.f32 0.5, %v1336_v44  ;;  %v1343_v22 = vadd.f32 1.0, %v1843_v47  ;;  %v1845_v25 = vpop.eup %1844 }
 0x5e7   :  { %v1847_v45 = vpop.eup %1846 }
 0x5e8   :  { %v1344_v24 = vmul.f32 0.5, %v1343_v22  ;;  %v1355_v62 = vmul.f32 %v1845_v25, %v1337_v52  ;;  %v1352_v46 = vadd.f32 1.0, %v1847_v45 }
 0x5ea   :  { %v1354_v57 = vmul.f32 %v1344_v24, %v2724_v55  ;;  %v1353_v48 = vmul.f32 0.5, %v1352_v46 }
 0x5ec   :  { %v2797_v60 = vadd.f32 %v1355_v62, %v1354_v57 }
 0x5ee   :  { %1848 = vtanh.f32 %v2797_v60 }
 0x5fb   :  { %v1849_v54 = vpop.eup %1848 }
 0x5fc   :  { %v1358_v50 = vmul.f32 %v1849_v54, %v1353_v48 }
 0x5fe   :  { %1426 = vmatmul.mubr.f32.vlgmr.msra.gmra.mxu0 %v1358_v50  ;;  %1497 = vmatmul.mubr.f32.vlgmr.msra.gmra.mxu1 %v1358_v50  ;;  %v1559_v50 = vld [vmem:[#allocation2 + $0x7] ss:$8 sm:$0xf] }
 0x5ff   :  { %1561 = vmatpush1.msra.mxu0 %v2530_v2  ;;  %1632 = vmatpush1.msra.mxu1 %v2533_v59  ;;  %v3118_v2 = vld [vmem:[#allocation14_spill] sm:$0xff]  ;;  %v3119_v59 = vld [vmem:[#allocation15_spill] sm:$0xff] }
 0x600   :  { %1562 = vmatprep.subr.mxu0 %v2536_v0  ;;  %1633 = vmatprep.subr.mxu1 %v2539_v56  ;;  %v3120_v0 = vld [vmem:[#allocation16_spill] sm:$0xff]  ;;  %v3121_v56 = vld [vmem:[#allocation17_spill] sm:$0xff] }
 0x601   :  { %1563 = vmatpush1.msra.mxu0 %v2542_v3  ;;  %1634 = vmatpush1.msra.mxu1 %v2545_v53  ;;  %v3122_v3 = vld [vmem:[#allocation10_spill] sm:$0xff]  ;;  %v3123_v53 = vld [vmem:[#allocation11_spill] sm:$0xff] }
 0x602   :  { %1564 = vmatprep.subr.mxu0 %v2548_v51  ;;  %1635 = vmatprep.subr.mxu1 %v2551_v4  ;;  %v3124_v51 = vld [vmem:[#allocation18_spill] sm:$0xff]  ;;  %v3125_v4 = vld [vmem:[#allocation19_spill] sm:$0xff] }
 0x603   :  { %1565 = vmatpush1.msra.mxu0 %v2554_v43  ;;  %1636 = vmatpush1.msra.mxu1 %v2557_v5  ;;  %v3126_v43 = vld [vmem:[#allocation20_spill] sm:$0xff]  ;;  %v3127_v5 = vld [vmem:[#allocation21_spill] sm:$0xff] }
 0x604   :  { %1566 = vmatprep.subr.mxu0 %v2560_v6  ;;  %1637 = vmatprep.subr.mxu1 %v2563_v7  ;;  %v3128_v6 = vld [vmem:[#allocation22_spill] sm:$0xff]  ;;  %v3129_v7 = vld [vmem:[#allocation23_spill] sm:$0xff] }
 0x605   :  { %1567 = vmatpush1.msra.mxu0 %v2566_v8  ;;  %1638 = vmatpush1.msra.mxu1 %v2569_v9  ;;  %v3130_v8 = vld [vmem:[#allocation24_spill] sm:$0xff]  ;;  %v3131_v9 = vld [vmem:[#allocation25_spill] sm:$0xff] }
 0x606   :  { %1568 = vmatprep.subr.mxu0 %v2572_v10  ;;  %1639 = vmatprep.subr.mxu1 %v2575_v11  ;;  %v3132_v10 = vld [vmem:[#allocation26_spill] sm:$0xff]  ;;  %v3133_v11 = vld [vmem:[#allocation27_spill] sm:$0xff] }
 0x607   :  { %1569 = vmatpush1.msra.mxu0 %v2578_v12  ;;  %1640 = vmatpush1.msra.mxu1 %v2581_v13  ;;  %v3134_v12 = vld [vmem:[#allocation28_spill] sm:$0xff]  ;;  %v3135_v13 = vmov 0.0  }
 0x608   :  { %1570 = vmatprep.subr.mxu0 %v2584_v14  ;;  %1641 = vmatprep.subr.mxu1 %v2587_v15  ;;  %v3136_v14 = vld [vmem:[#allocation29_spill] sm:$0xff] }
 0x609   :  { %1571 = vmatpush1.msra.mxu0 %v2590_v16  ;;  %1642 = vmatpush1.msra.mxu1 %v2593_v17 }
 0x60a   :  { %1572 = vmatprep.subr.mxu0 %v2596_v18  ;;  %1643 = vmatprep.subr.mxu1 %v2599_v19 }
 0x60b   :  { %1573 = vmatpush1.msra.mxu0 %v2602_v20  ;;  %1644 = vmatpush1.msra.mxu1 %v2605_v21 }
 0x60c   :  { %1574 = vmatprep.subr.mxu0 %v2608_v23  ;;  %1645 = vmatprep.subr.mxu1 %v2611_v26 }
 0x60d   :  { %1575 = vmatpush1.msra.mxu0 %v2614_v27  ;;  %1646 = vmatpush1.msra.mxu1 %v2617_v28  ;;  %v1360_v28 = vld [vmem:[#allocation2 + $0x6] ss:$8 sm:$0xf] }
 0x60e   :  { %1576 = vmatprep.subr.mxu0 %v2620_v29  ;;  %1647 = vmatprep.subr.mxu1 %v2623_v30 }
 0x60f   :  { %1577 = vmatpush1.msra.mxu0 %v2626_v31  ;;  %1648 = vmatpush1.msra.mxu1 %v2629_v32 }
 0x610   :  { %1578 = vmatprep.subr.mxu0 %v2632_v33  ;;  %1649 = vmatprep.subr.mxu1 %v2635_v34 }
 0x611   :  { %1579 = vmatpush1.msra.mxu0 %v2638_v35  ;;  %1650 = vmatpush1.msra.mxu1 %v2641_v36 }
 0x612   :  { %1580 = vmatprep.subr.mxu0 %v2644_v37  ;;  %1651 = vmatprep.subr.mxu1 %v2647_v38 }
 0x613   :  { %1581 = vmatpush1.msra.mxu0 %v2650_v39  ;;  %1652 = vmatpush1.msra.mxu1 %v2653_v40 }
 0x614   :  { %1582 = vmatprep.subr.mxu0 %v2656_v41  ;;  %1653 = vmatprep.subr.mxu1 %v2659_v42 }
 0x615   :  { %1583 = vmatpush1.msra.mxu0 %v3118_v2  ;;  %1654 = vmatpush1.msra.mxu1 %v3119_v59 }
 0x616   :  { %1584 = vmatprep.subr.mxu0 %v3120_v0  ;;  %1655 = vmatprep.subr.mxu1 %v3121_v56 }
 0x617   :  { %1585 = vmatpush1.msra.mxu0 %v3122_v3  ;;  %1656 = vmatpush1.msra.mxu1 %v3123_v53 }
 0x618   :  { %1586 = vmatprep.subr.mxu0 %v3124_v51  ;;  %1657 = vmatprep.subr.mxu1 %v3125_v4 }
 0x619   :  { %1587 = vmatpush1.msra.mxu0 %v3126_v43  ;;  %1658 = vmatpush1.msra.mxu1 %v3127_v5 }
 0x61a   :  { %1588 = vmatprep.subr.mxu0 %v3128_v6  ;;  %1659 = vmatprep.subr.mxu1 %v3129_v7 }
 0x61b   :  { %1589 = vmatpush1.msra.mxu0 %v3130_v8  ;;  %1660 = vmatpush1.msra.mxu1 %v3131_v9 }
 0x61c   :  { %1590 = vmatprep.subr.mxu0 %v3132_v10  ;;  %1661 = vmatprep.subr.mxu1 %v3133_v11 }
 0x61d   :  { %1591 = vmatpush1.msra.mxu0 %v3134_v12  ;;  %1624 = vmatprep.mubr.f32.mxu0 %v3135_v13 }
 0x61e   :  { %1662 = vmatpush1.msra.mxu1 %v3136_v14  ;;  %1695 = vmatprep.mubr.f32.mxu1 %v3135_v13 }
 0x6be   :  { %v1427_v15 = vpop.f32.mrf.mxu0  ;;  %v1498_v16 = vpop.f32.mrf.mxu1 }
 0x6c0   :  { %v1429_v17 = vpop.f32.mrf.mxu0  ;;  %v1500_v18 = vpop.f32.mrf.mxu1 }
 0x6c1   :  { %v1507_v19 = vcombine.low %v1427_v15, %v1429_v17  ;;  %v1508_v20 = vcombine.low %v1498_v16, %v1500_v18  ;;  %v1757_v16 = vld [vmem:[%s2881_s4] sm:$0x1] }
 0x6c3   :  { %v1515_v21 = vrot.slane %v1507_v19, %v2299_v58  ;;  %v1522_v23 = vrot.slane %v1508_v20, %v2299_v58  ;;  %v1763_v20 = vld [vmem:[#allocation3] sm:$0x1] }
 0x6c5   :  { %v1523_v26 = vcombine.low %v1515_v21, %v1522_v23 }
 0x6c7   :  { %v1530_v27 = vrot.slane %v1523_v26, %v2299_v58 }
 0x6c9   :  { %v1532_v29 = vadd.f32 %v1530_v27, %v1360_v28 }
 0x6cb   :  { %v1533_v30 = vmul.f32 0.5, %v1532_v29  ;;  %v1538_v31 = vrot.slane %v1532_v29, 1  ;;  %v1544_v33 = vrot.slane %v1532_v29, 2  ;;  %v1547_v34 = vrot.slane %v1532_v29, 3 }
 0x6cd   :  { %1850 = vtanh.f32 %v1533_v30  ;;  %v1540_v32 = vmul.f32 0.5, %v1538_v31  ;;  %v1549_v35 = vmul.f32 0.5, %v1547_v34 }
 0x6cf   :  { %1852 = vtanh.f32 %v1540_v32 }
 0x6d0   :  { %1854 = vtanh.f32 %v1544_v33 }
 0x6d1   :  { %1856 = vtanh.f32 %v1549_v35 }
 0x6da   :  { %v1851_v36 = vpop.eup %1850 }
 0x6db   :  { %v1535_v37 = vadd.f32 1.0, %v1851_v36 }
 0x6dc   :  { %v1853_v38 = vpop.eup %1852 }
 0x6dd   :  { %v1536_v39 = vmul.f32 0.5, %v1535_v37  ;;  %v1542_v40 = vadd.f32 1.0, %v1853_v38  ;;  %v1855_v42 = vpop.eup %1854 }
 0x6de   :  { %v1857_v1 = vpop.eup %1856 }
 0x6df   :  { %v1543_v41 = vmul.f32 0.5, %v1542_v40  ;;  %v1554_v63 = vmul.f32 %v1855_v42, %v1536_v39  ;;  %v1551_v49 = vadd.f32 1.0, %v1857_v1 }
 0x6e1   :  { %v1553_v55 = vmul.f32 %v1543_v41, %v2797_v60  ;;  %v1552_v44 = vmul.f32 0.5, %v1551_v49 }
 0x6e3   :  { %v1555_v61 = vadd.f32 %v1554_v63, %v1553_v55 }
 0x6e5   :  { %1858 = vtanh.f32 %v1555_v61 }
 0x6f2   :  { %v1859_v47 = vpop.eup %1858 }
 0x6f3   :  { %v1557_v52 = vmul.f32 %v1859_v47, %v1552_v44 }
 0x6f5   :  { %1625 = vmatmul.mubr.f32.vlgmr.msra.gmra.mxu0 %v1557_v52  ;;  %1696 = vmatmul.mubr.f32.vlgmr.msra.gmra.mxu1 %v1557_v52 }
 0x7b5   :  { %v1626_v22 = vpop.f32.mrf.mxu0  ;;  %v1697_v24 = vpop.f32.mrf.mxu1 }
 0x7b7   :  { %v1628_v25 = vpop.f32.mrf.mxu0  ;;  %v1699_v57 = vpop.f32.mrf.mxu1 }
 0x7b8   :  { %v1706_v62 = vcombine.low %v1626_v22, %v1628_v25  ;;  %v1707_v45 = vcombine.low %v1697_v24, %v1699_v57 }
 0x7ba   :  { %v1714_v46 = vrot.slane %v1706_v62, %v2299_v58  ;;  %v1721_v60 = vrot.slane %v1707_v45, %v2299_v58 }
 0x7bc   :  { %v1722_v48 = vcombine.low %v1714_v46, %v1721_v60 }
 0x7be   :  { %v1729_v54 = vrot.slane %v1722_v48, %v2299_v58 }
 0x7c0   :  { %v1731_v2 = vadd.f32 %v1729_v54, %v1559_v50 }
 0x7c2   :  { %v1732_v59 = vmul.f32 0.5, %v1731_v2  ;;  %v1737_v0 = vrot.slane %v1731_v2, 1  ;;  %v1743_v3 = vrot.slane %v1731_v2, 2  ;;  %v1746_v53 = vrot.slane %v1731_v2, 3 }
 0x7c4   :  { %1860 = vtanh.f32 %v1732_v59  ;;  %v1739_v56 = vmul.f32 0.5, %v1737_v0  ;;  %v1748_v51 = vmul.f32 0.5, %v1746_v53 }
 0x7c6   :  { %1862 = vtanh.f32 %v1739_v56 }
 0x7c7   :  { %1864 = vtanh.f32 %v1743_v3 }
 0x7c8   :  { %1866 = vtanh.f32 %v1748_v51 }
 0x7d1   :  { %v1861_v4 = vpop.eup %1860 }
 0x7d2   :  { %v1734_v43 = vadd.f32 1.0, %v1861_v4 }
 0x7d3   :  { %v1863_v5 = vpop.eup %1862 }
 0x7d4   :  { %v1735_v6 = vmul.f32 0.5, %v1734_v43  ;;  %v1741_v7 = vadd.f32 1.0, %v1863_v5  ;;  %v1865_v9 = vpop.eup %1864 }
 0x7d5   :  { %v1867_v12 = vpop.eup %1866 }
 0x7d6   :  { %v1742_v8 = vmul.f32 0.5, %v1741_v7  ;;  %v1753_v10 = vmul.f32 %v1865_v9, %v1735_v6  ;;  %v1750_v13 = vadd.f32 1.0, %v1867_v12 }
 0x7d8   :  { %v1752_v58 = vmul.f32 %v1742_v8, %v1555_v61  ;;  %v1751_v14 = vmul.f32 0.5, %v1750_v13 }
 0x7da   :  { %v1754_v11 = vadd.f32 %v1753_v10, %v1752_v58 }
 0x7dc   :  { %1868 = vtanh.f32 %v1754_v11 }
 0x7e9   :  { %v1869_v15 = vpop.eup %1868 }
 0x7ea   :  { %v1756_v17 = vmul.f32 %v1869_v15, %v1751_v14 }
 0x7ec   :  { %v1758_v18 = vmul.f32 %v1757_v16, %v1756_v17 }
 0x7ee   :  { %v1760_v19 = vsel %vm1759_vm0, %v1758_v18, 0.0 }
 0x7ef   :  { %1761 = vadd.xlane.f32.xlu0 %v1760_v19 }
 0x878   :  { %v1762_v21 = vpop.xlane.xlu0 %1761 }
 0x879   :  { %v1764_v23 = vadd.f32 %v1763_v20, %v1762_v21 }
 0x87b   :  { %1766 = vst.msk [vmem:[#allocation7] sm:$0x1] %vm1765_vm1, %v1764_v23 }
 0x87c   :  { %1965 = shalt.err (!%p1962_p9)
}
 0x87d   :  { %1776 = dma.vmem_to_hbm [thread:$0]  %s1774_s10, 16, %s2883_s6, [#allocation6]  }
 0x87e   :  { %1976 = dma.done.wait [#allocation6], 16  }
 0x87f   :  { %1977 = vsyncadd [#allocation6], 4294967280 }
 0x880   :  { %1780 = vsyncpa [#allocation5], 1 }
 0x881   :  { %1781 = vsyncpa [#allocation6], 1 }

</bundles_post_ra>
